<compile_context>
chip_gen: v7x
topology: tpu7x:2x2x1
jax: 0.10.0
libtpu: 0.0.40
codegen_flags: <defaults>
</compile_context>

<pallas_src>
import functools

import jax
import jax.numpy as jnp
import numpy as np
from jax import lax
from jax.experimental import pallas as pl
from jax.experimental.pallas import tpu as pltpu


# ---------------------------------------------------------------------------
# Pallas kernel
# ---------------------------------------------------------------------------
def ncc_kernel(x_ref,
               wih1_ref, whh1_ref, b1_ref,
               w2cat_ref, b2_ref,
               gamma_ref, beta_ref,
               w1_ref, bd1_ref, w2_ref, bd2_ref,
               out_ref, *, B, T, E):
    whh1 = whh1_ref[...]                                # (E, 4E)
    b1 = b1_ref[...]                                    # (1, 4E)
    w2cat = w2cat_ref[...]                              # (2E, 4E)
    b2 = b2_ref[...]                                    # (1, 4E)

    # --- Opt 1: hoist the LSTM-1 input projection out of the recurrence.
    # One (T*B, E)@(E, 4E) matmul instead of T tiny (B,E)@(E,4E) matmuls.
    pre1 = jnp.dot(x_ref[...], wih1_ref[...],
                   preferred_element_type=jnp.float32) + b1      # (T*B, 4E)

    def gates_to_hc(gates, c):
        # --- Opt 4: two full-vreg transcendental pushes, slice afterwards.
        sg = jax.nn.sigmoid(gates)                      # (B, 4E)
        tg = jnp.tanh(gates)                            # (B, 4E)
        i = sg[:, 0 * E:1 * E]
        f = sg[:, 1 * E:2 * E]
        g = tg[:, 2 * E:3 * E]
        o = sg[:, 3 * E:4 * E]
        c_new = f * c + i * g
        h_new = o * jnp.tanh(c_new)
        return h_new, c_new

    zeros = jnp.zeros((B, E), jnp.float32)
    h1, c1, h2, c2 = zeros, zeros, zeros, zeros

    # --- Opt 2 + 5: fully unrolled time loop (T static) with static indexing
    # of the precomputed LSTM-1 gate projection (no dynamic slices at all).
    for t in range(T):
        # LSTM-1: only the recurrent matmul is left on the sequential chain.
        gates1 = pre1[t * B:(t + 1) * B, :] + jnp.dot(
            h1, whh1, preferred_element_type=jnp.float32)
        h1, c1 = gates_to_hc(gates1, c1)

        # tanh on lstm_1's per-step output feeds lstm_2
        x2 = jnp.tanh(h1)

        # LSTM-2: --- Opt 3: single fused matmul [x2, h2] @ [wih2; whh2].
        gates2 = jnp.dot(jnp.concatenate([x2, h2], axis=1), w2cat,
                         preferred_element_type=jnp.float32) + b2
        h2, c2 = gates_to_hc(gates2, c2)

    # x = tanh(h.squeeze(0))  -- final hidden state of lstm_2
    x = jnp.tanh(h2)                                    # (B, E)

    # BatchNorm1d (training mode: batch stats, biased variance, eps=1e-5)
    mean = jnp.mean(x, axis=0, keepdims=True)
    var = jnp.mean((x - mean) ** 2, axis=0, keepdims=True)
    xn = (x - mean) * lax.rsqrt(var + 1e-5)
    xn = xn * gamma_ref[...] + beta_ref[...]

    # dense_1: Linear + ReLU
    hid = jnp.maximum(
        jnp.dot(xn, w1_ref[...], preferred_element_type=jnp.float32) + bd1_ref[...],
        0.0)
    # dense_2: Linear + Sigmoid
    out = jax.nn.sigmoid(
        jnp.dot(hid, w2_ref[...], preferred_element_type=jnp.float32) + bd2_ref[...])

    out_ref[...] = out.astype(out_ref.dtype)


# ---------------------------------------------------------------------------
# Wrapper
# ---------------------------------------------------------------------------
def ncc_classifier_forward(x_btE, params):
    """x_btE: (B, T, E) float32, like the PyTorch module (batch_first=True)."""
    B, T, E = x_btE.shape
    C = params["w2"].shape[1]

    # Time-major flatten so the LSTM-1 input projection is one batched matmul
    # inside the kernel: rows t*B:(t+1)*B correspond to timestep t.
    x_flat = jnp.transpose(x_btE, (1, 0, 2)).reshape(T * B, E)

    # Fuse LSTM-2's two per-step matmuls: [wih2; whh2] -> (2E, 4E).
    w2cat = jnp.concatenate([params["wih2"], params["whh2"]], axis=0)

    operands = (
        x_flat,
        params["wih1"], params["whh1"], params["b1"],
        w2cat, params["b2"],
        params["gamma"], params["beta"],
        params["w1"], params["bd1"],
        params["w2"], params["bd2"],
    )

    vmem = pl.BlockSpec(memory_space=pltpu.MemorySpace.VMEM)
    kernel = functools.partial(ncc_kernel, B=B, T=T, E=E)

    # Whole working set is <100 KiB: everything VMEM-resident, no grid/tiling.
    # TODO(synk): if ever run with very large batches, shard the batch across
    # TensorCores *only* if BatchNorm switches to eval-mode running stats.
    return pl.pallas_call(
        kernel,
        out_shape=jax.ShapeDtypeStruct((B, C), jnp.float32),
        in_specs=[vmem] * len(operands),
        out_specs=vmem,
    )(*operands)


# ---------------------------------------------------------------------------
# Pure-JAX reference (same math, no Pallas) for a correctness cross-check
# ---------------------------------------------------------------------------
def ncc_reference(x_btE, params):
    B, T, E = x_btE.shape

    def cell(x_t, h, c, wih, whh, b):
        g = x_t @ wih + h @ whh + b
        i = jax.nn.sigmoid(g[:, :E]); f = jax.nn.sigmoid(g[:, E:2 * E])
        gg = jnp.tanh(g[:, 2 * E:3 * E]); o = jax.nn.sigmoid(g[:, 3 * E:])
        c = f * c + i * gg
        return o * jnp.tanh(c), c

    h1 = c1 = h2 = c2 = jnp.zeros((B, E), jnp.float32)
    for t in range(T):
        h1, c1 = cell(x_btE[:, t, :], h1, c1, params["wih1"], params["whh1"], params["b1"])
        h2, c2 = cell(jnp.tanh(h1), h2, c2, params["wih2"], params["whh2"], params["b2"])
    x = jnp.tanh(h2)
    mean = jnp.mean(x, axis=0, keepdims=True)
    var = jnp.mean((x - mean) ** 2, axis=0, keepdims=True)
    xn = (x - mean) / jnp.sqrt(var + 1e-5) * params["gamma"] + params["beta"]
    hid = jnp.maximum(xn @ params["w1"] + params["bd1"], 0.0)
    return jax.nn.sigmoid(hid @ params["w2"] + params["bd2"])


# ---------------------------------------------------------------------------
# Deterministic parameter construction (PyTorch-style uniform(-k, k) init)
# ---------------------------------------------------------------------------
def make_params(key, E, D, C):
    ks = jax.random.split(key, 16)
    k_lstm = 1.0 / np.sqrt(E)
    k_d1 = 1.0 / np.sqrt(E)
    k_d2 = 1.0 / np.sqrt(D)
    u = lambda k, shape, lim: jax.random.uniform(k, shape, jnp.float32, -lim, lim)
    return {
        # LSTM 1 (weights stored transposed: (in, 4E)), combined bias b_ih+b_hh
        "wih1": u(ks[0], (E, 4 * E), k_lstm),
        "whh1": u(ks[1], (E, 4 * E), k_lstm),
        "b1":   u(ks[2], (1, 4 * E), k_lstm) + u(ks[3], (1, 4 * E), k_lstm),
        # LSTM 2
        "wih2": u(ks[4], (E, 4 * E), k_lstm),
        "whh2": u(ks[5], (E, 4 * E), k_lstm),
        "b2":   u(ks[6], (1, 4 * E), k_lstm) + u(ks[7], (1, 4 * E), k_lstm),
        # BatchNorm1d affine params (fresh module: gamma=1, beta=0)
        "gamma": jnp.ones((1, E), jnp.float32),
        "beta":  jnp.zeros((1, E), jnp.float32),
        # dense_1 (Linear E->D), stored transposed
        "w1":  u(ks[8], (E, D), k_d1),
        "bd1": u(ks[9], (1, D), k_d1),
        # dense_2 (Linear D->C), stored transposed
        "w2":  u(ks[10], (D, C), k_d2),
        "bd2": u(ks[11], (1, C), k_d2),
    }


if __name__ == "__main__":
    B, T, E = 2, 8, 32          # batch, seq, embedding_dim
    D, C = 32, 4                # dense_layer_size, num_classes

    key = jax.random.PRNGKey(0)
    kx, kp = jax.random.split(key)
    x = jax.random.normal(kx, (B, T, E), jnp.float32)
    params = make_params(kp, E, D, C)

    out = ncc_classifier_forward(x, params)
    out = jax.block_until_ready(out)

    ref = ncc_reference(x, params)
    np.testing.assert_allclose(np.asarray(out), np.asarray(ref), rtol=1e-5, atol=1e-5)

    print("KERNEL_OK")
</pallas_src>

<mosaic_0001>
module attributes {stable_mosaic.version = 11 : i64} {
  func.func @ncc_kernel(%arg0: memref<16x32xf32, #tpu.memory_space<vmem>>, %arg1: memref<32x128xf32, #tpu.memory_space<vmem>>, %arg2: memref<32x128xf32, #tpu.memory_space<vmem>>, %arg3: memref<1x128xf32, #tpu.memory_space<vmem>>, %arg4: memref<64x128xf32, #tpu.memory_space<vmem>>, %arg5: memref<1x128xf32, #tpu.memory_space<vmem>>, %arg6: memref<1x32xf32, #tpu.memory_space<vmem>>, %arg7: memref<1x32xf32, #tpu.memory_space<vmem>>, %arg8: memref<32x32xf32, #tpu.memory_space<vmem>>, %arg9: memref<1x32xf32, #tpu.memory_space<vmem>>, %arg10: memref<32x4xf32, #tpu.memory_space<vmem>>, %arg11: memref<1x4xf32, #tpu.memory_space<vmem>>, %arg12: memref<2x4xf32, #tpu.memory_space<vmem>>) attributes {dimension_semantics = [], scalar_prefetch = 0 : i64, scratch_operands = 0 : i64, tpu.core_type = #tpu.core_type<tc>} {
    %c0 = arith.constant 0 : index
    %c0_0 = arith.constant 0 : index
    %0 = vector.load %arg2[%c0, %c0_0] : memref<32x128xf32, #tpu.memory_space<vmem>>, vector<32x128xf32>
    %c0_1 = arith.constant 0 : index
    %c0_2 = arith.constant 0 : index
    %1 = vector.load %arg3[%c0_1, %c0_2] : memref<1x128xf32, #tpu.memory_space<vmem>>, vector<1x128xf32>
    %c0_3 = arith.constant 0 : index
    %c0_4 = arith.constant 0 : index
    %2 = vector.load %arg4[%c0_3, %c0_4] : memref<64x128xf32, #tpu.memory_space<vmem>>, vector<64x128xf32>
    %c0_5 = arith.constant 0 : index
    %c0_6 = arith.constant 0 : index
    %3 = vector.load %arg5[%c0_5, %c0_6] : memref<1x128xf32, #tpu.memory_space<vmem>>, vector<1x128xf32>
    %c0_7 = arith.constant 0 : index
    %c0_8 = arith.constant 0 : index
    %4 = vector.load %arg0[%c0_7, %c0_8] : memref<16x32xf32, #tpu.memory_space<vmem>>, vector<16x32xf32>
    %c0_9 = arith.constant 0 : index
    %c0_10 = arith.constant 0 : index
    %5 = vector.load %arg1[%c0_9, %c0_10] : memref<32x128xf32, #tpu.memory_space<vmem>>, vector<32x128xf32>
    %cst = arith.constant dense<0.000000e+00> : vector<16x128xf32>
    %6 = tpu.matmul %4, %5, %cst {dimension_numbers = #tpu.dot_dimension_numbers<[1], [0], [0], [1], [0, 0, 1, 1], [], []>} : vector<16x32xf32>, vector<32x128xf32>, vector<16x128xf32> -> vector<16x128xf32>
    %7 = vector.broadcast %1 : vector<1x128xf32> to vector<16x128xf32>
    %8 = arith.addf %6, %7 : vector<16x128xf32>
    %cst_11 = arith.constant 0.000000e+00 : f32
    %9 = vector.broadcast %cst_11 : f32 to vector<2x32xf32>
    %10 = vector.extract_strided_slice %8 {offsets = [0, 0], sizes = [2, 128], strides = [1, 1]} : vector<16x128xf32> to vector<2x128xf32>
    %cst_12 = arith.constant dense<0.000000e+00> : vector<2x128xf32>
    %11 = tpu.matmul %9, %0, %cst_12 {dimension_numbers = #tpu.dot_dimension_numbers<[1], [0], [0], [1], [0, 0, 1, 1], [], []>} : vector<2x32xf32>, vector<32x128xf32>, vector<2x128xf32> -> vector<2x128xf32>
    %12 = arith.addf %10, %11 : vector<2x128xf32>
    %13 = arith.negf %12 : vector<2x128xf32>
    %14 = math.exp %13 : vector<2x128xf32>
    %cst_13 = arith.constant 1.000000e+00 : f32
    %15 = vector.broadcast %cst_13 : f32 to vector<2x128xf32>
    %16 = arith.addf %15, %14 : vector<2x128xf32>
    %17 = arith.divf %15, %16 : vector<2x128xf32>
    %18 = math.tanh %12 : vector<2x128xf32>
    %19 = vector.extract_strided_slice %17 {offsets = [0, 0], sizes = [2, 32], strides = [1, 1]} : vector<2x128xf32> to vector<2x32xf32>
    %20 = vector.extract_strided_slice %17 {offsets = [0, 32], sizes = [2, 32], strides = [1, 1]} : vector<2x128xf32> to vector<2x32xf32>
    %21 = vector.extract_strided_slice %18 {offsets = [0, 64], sizes = [2, 32], strides = [1, 1]} : vector<2x128xf32> to vector<2x32xf32>
    %22 = vector.extract_strided_slice %17 {offsets = [0, 96], sizes = [2, 32], strides = [1, 1]} : vector<2x128xf32> to vector<2x32xf32>
    %23 = arith.mulf %20, %9 : vector<2x32xf32>
    %24 = arith.mulf %19, %21 : vector<2x32xf32>
    %25 = arith.addf %23, %24 : vector<2x32xf32>
    %26 = math.tanh %25 : vector<2x32xf32>
    %27 = arith.mulf %22, %26 : vector<2x32xf32>
    %28 = math.tanh %27 : vector<2x32xf32>
    %29 = tpu.concatenate %28, %9 in 1 : vector<2x32xf32>, vector<2x32xf32> -> vector<2x64xf32>
    %cst_14 = arith.constant dense<0.000000e+00> : vector<2x128xf32>
    %30 = tpu.matmul %29, %2, %cst_14 {dimension_numbers = #tpu.dot_dimension_numbers<[1], [0], [0], [1], [0, 0, 1, 1], [], []>} : vector<2x64xf32>, vector<64x128xf32>, vector<2x128xf32> -> vector<2x128xf32>
    %31 = vector.broadcast %3 : vector<1x128xf32> to vector<2x128xf32>
    %32 = arith.addf %30, %31 : vector<2x128xf32>
    %33 = arith.negf %32 : vector<2x128xf32>
    %34 = math.exp %33 : vector<2x128xf32>
    %cst_15 = arith.constant 1.000000e+00 : f32
    %35 = vector.broadcast %cst_15 : f32 to vector<2x128xf32>
    %36 = arith.addf %35, %34 : vector<2x128xf32>
    %37 = arith.divf %35, %36 : vector<2x128xf32>
    %38 = math.tanh %32 : vector<2x128xf32>
    %39 = vector.extract_strided_slice %37 {offsets = [0, 0], sizes = [2, 32], strides = [1, 1]} : vector<2x128xf32> to vector<2x32xf32>
    %40 = vector.extract_strided_slice %37 {offsets = [0, 32], sizes = [2, 32], strides = [1, 1]} : vector<2x128xf32> to vector<2x32xf32>
    %41 = vector.extract_strided_slice %38 {offsets = [0, 64], sizes = [2, 32], strides = [1, 1]} : vector<2x128xf32> to vector<2x32xf32>
    %42 = vector.extract_strided_slice %37 {offsets = [0, 96], sizes = [2, 32], strides = [1, 1]} : vector<2x128xf32> to vector<2x32xf32>
    %43 = arith.mulf %40, %9 : vector<2x32xf32>
    %44 = arith.mulf %39, %41 : vector<2x32xf32>
    %45 = arith.addf %43, %44 : vector<2x32xf32>
    %46 = math.tanh %45 : vector<2x32xf32>
    %47 = arith.mulf %42, %46 : vector<2x32xf32>
    %48 = vector.extract_strided_slice %8 {offsets = [2, 0], sizes = [2, 128], strides = [1, 1]} : vector<16x128xf32> to vector<2x128xf32>
    %cst_16 = arith.constant dense<0.000000e+00> : vector<2x128xf32>
    %49 = tpu.matmul %27, %0, %cst_16 {dimension_numbers = #tpu.dot_dimension_numbers<[1], [0], [0], [1], [0, 0, 1, 1], [], []>} : vector<2x32xf32>, vector<32x128xf32>, vector<2x128xf32> -> vector<2x128xf32>
    %50 = arith.addf %48, %49 : vector<2x128xf32>
    %51 = arith.negf %50 : vector<2x128xf32>
    %52 = math.exp %51 : vector<2x128xf32>
    %cst_17 = arith.constant 1.000000e+00 : f32
    %53 = vector.broadcast %cst_17 : f32 to vector<2x128xf32>
    %54 = arith.addf %53, %52 : vector<2x128xf32>
    %55 = arith.divf %53, %54 : vector<2x128xf32>
    %56 = math.tanh %50 : vector<2x128xf32>
    %57 = vector.extract_strided_slice %55 {offsets = [0, 0], sizes = [2, 32], strides = [1, 1]} : vector<2x128xf32> to vector<2x32xf32>
    %58 = vector.extract_strided_slice %55 {offsets = [0, 32], sizes = [2, 32], strides = [1, 1]} : vector<2x128xf32> to vector<2x32xf32>
    %59 = vector.extract_strided_slice %56 {offsets = [0, 64], sizes = [2, 32], strides = [1, 1]} : vector<2x128xf32> to vector<2x32xf32>
    %60 = vector.extract_strided_slice %55 {offsets = [0, 96], sizes = [2, 32], strides = [1, 1]} : vector<2x128xf32> to vector<2x32xf32>
    %61 = arith.mulf %58, %25 : vector<2x32xf32>
    %62 = arith.mulf %57, %59 : vector<2x32xf32>
    %63 = arith.addf %61, %62 : vector<2x32xf32>
    %64 = math.tanh %63 : vector<2x32xf32>
    %65 = arith.mulf %60, %64 : vector<2x32xf32>
    %66 = math.tanh %65 : vector<2x32xf32>
    %67 = tpu.concatenate %66, %47 in 1 : vector<2x32xf32>, vector<2x32xf32> -> vector<2x64xf32>
    %cst_18 = arith.constant dense<0.000000e+00> : vector<2x128xf32>
    %68 = tpu.matmul %67, %2, %cst_18 {dimension_numbers = #tpu.dot_dimension_numbers<[1], [0], [0], [1], [0, 0, 1, 1], [], []>} : vector<2x64xf32>, vector<64x128xf32>, vector<2x128xf32> -> vector<2x128xf32>
    %69 = vector.broadcast %3 : vector<1x128xf32> to vector<2x128xf32>
    %70 = arith.addf %68, %69 : vector<2x128xf32>
    %71 = arith.negf %70 : vector<2x128xf32>
    %72 = math.exp %71 : vector<2x128xf32>
    %cst_19 = arith.constant 1.000000e+00 : f32
    %73 = vector.broadcast %cst_19 : f32 to vector<2x128xf32>
    %74 = arith.addf %73, %72 : vector<2x128xf32>
    %75 = arith.divf %73, %74 : vector<2x128xf32>
    %76 = math.tanh %70 : vector<2x128xf32>
    %77 = vector.extract_strided_slice %75 {offsets = [0, 0], sizes = [2, 32], strides = [1, 1]} : vector<2x128xf32> to vector<2x32xf32>
    %78 = vector.extract_strided_slice %75 {offsets = [0, 32], sizes = [2, 32], strides = [1, 1]} : vector<2x128xf32> to vector<2x32xf32>
    %79 = vector.extract_strided_slice %76 {offsets = [0, 64], sizes = [2, 32], strides = [1, 1]} : vector<2x128xf32> to vector<2x32xf32>
    %80 = vector.extract_strided_slice %75 {offsets = [0, 96], sizes = [2, 32], strides = [1, 1]} : vector<2x128xf32> to vector<2x32xf32>
    %81 = arith.mulf %78, %45 : vector<2x32xf32>
    %82 = arith.mulf %77, %79 : vector<2x32xf32>
    %83 = arith.addf %81, %82 : vector<2x32xf32>
    %84 = math.tanh %83 : vector<2x32xf32>
    %85 = arith.mulf %80, %84 : vector<2x32xf32>
    %86 = vector.extract_strided_slice %8 {offsets = [4, 0], sizes = [2, 128], strides = [1, 1]} : vector<16x128xf32> to vector<2x128xf32>
    %cst_20 = arith.constant dense<0.000000e+00> : vector<2x128xf32>
    %87 = tpu.matmul %65, %0, %cst_20 {dimension_numbers = #tpu.dot_dimension_numbers<[1], [0], [0], [1], [0, 0, 1, 1], [], []>} : vector<2x32xf32>, vector<32x128xf32>, vector<2x128xf32> -> vector<2x128xf32>
    %88 = arith.addf %86, %87 : vector<2x128xf32>
    %89 = arith.negf %88 : vector<2x128xf32>
    %90 = math.exp %89 : vector<2x128xf32>
    %cst_21 = arith.constant 1.000000e+00 : f32
    %91 = vector.broadcast %cst_21 : f32 to vector<2x128xf32>
    %92 = arith.addf %91, %90 : vector<2x128xf32>
    %93 = arith.divf %91, %92 : vector<2x128xf32>
    %94 = math.tanh %88 : vector<2x128xf32>
    %95 = vector.extract_strided_slice %93 {offsets = [0, 0], sizes = [2, 32], strides = [1, 1]} : vector<2x128xf32> to vector<2x32xf32>
    %96 = vector.extract_strided_slice %93 {offsets = [0, 32], sizes = [2, 32], strides = [1, 1]} : vector<2x128xf32> to vector<2x32xf32>
    %97 = vector.extract_strided_slice %94 {offsets = [0, 64], sizes = [2, 32], strides = [1, 1]} : vector<2x128xf32> to vector<2x32xf32>
    %98 = vector.extract_strided_slice %93 {offsets = [0, 96], sizes = [2, 32], strides = [1, 1]} : vector<2x128xf32> to vector<2x32xf32>
    %99 = arith.mulf %96, %63 : vector<2x32xf32>
    %100 = arith.mulf %95, %97 : vector<2x32xf32>
    %101 = arith.addf %99, %100 : vector<2x32xf32>
    %102 = math.tanh %101 : vector<2x32xf32>
    %103 = arith.mulf %98, %102 : vector<2x32xf32>
    %104 = math.tanh %103 : vector<2x32xf32>
    %105 = tpu.concatenate %104, %85 in 1 : vector<2x32xf32>, vector<2x32xf32> -> vector<2x64xf32>
    %cst_22 = arith.constant dense<0.000000e+00> : vector<2x128xf32>
    %106 = tpu.matmul %105, %2, %cst_22 {dimension_numbers = #tpu.dot_dimension_numbers<[1], [0], [0], [1], [0, 0, 1, 1], [], []>} : vector<2x64xf32>, vector<64x128xf32>, vector<2x128xf32> -> vector<2x128xf32>
    %107 = vector.broadcast %3 : vector<1x128xf32> to vector<2x128xf32>
    %108 = arith.addf %106, %107 : vector<2x128xf32>
    %109 = arith.negf %108 : vector<2x128xf32>
    %110 = math.exp %109 : vector<2x128xf32>
    %cst_23 = arith.constant 1.000000e+00 : f32
    %111 = vector.broadcast %cst_23 : f32 to vector<2x128xf32>
    %112 = arith.addf %111, %110 : vector<2x128xf32>
    %113 = arith.divf %111, %112 : vector<2x128xf32>
    %114 = math.tanh %108 : vector<2x128xf32>
    %115 = vector.extract_strided_slice %113 {offsets = [0, 0], sizes = [2, 32], strides = [1, 1]} : vector<2x128xf32> to vector<2x32xf32>
    %116 = vector.extract_strided_slice %113 {offsets = [0, 32], sizes = [2, 32], strides = [1, 1]} : vector<2x128xf32> to vector<2x32xf32>
    %117 = vector.extract_strided_slice %114 {offsets = [0, 64], sizes = [2, 32], strides = [1, 1]} : vector<2x128xf32> to vector<2x32xf32>
    %118 = vector.extract_strided_slice %113 {offsets = [0, 96], sizes = [2, 32], strides = [1, 1]} : vector<2x128xf32> to vector<2x32xf32>
    %119 = arith.mulf %116, %83 : vector<2x32xf32>
    %120 = arith.mulf %115, %117 : vector<2x32xf32>
    %121 = arith.addf %119, %120 : vector<2x32xf32>
    %122 = math.tanh %121 : vector<2x32xf32>
    %123 = arith.mulf %118, %122 : vector<2x32xf32>
    %124 = vector.extract_strided_slice %8 {offsets = [6, 0], sizes = [2, 128], strides = [1, 1]} : vector<16x128xf32> to vector<2x128xf32>
    %cst_24 = arith.constant dense<0.000000e+00> : vector<2x128xf32>
    %125 = tpu.matmul %103, %0, %cst_24 {dimension_numbers = #tpu.dot_dimension_numbers<[1], [0], [0], [1], [0, 0, 1, 1], [], []>} : vector<2x32xf32>, vector<32x128xf32>, vector<2x128xf32> -> vector<2x128xf32>
    %126 = arith.addf %124, %125 : vector<2x128xf32>
    %127 = arith.negf %126 : vector<2x128xf32>
    %128 = math.exp %127 : vector<2x128xf32>
    %cst_25 = arith.constant 1.000000e+00 : f32
    %129 = vector.broadcast %cst_25 : f32 to vector<2x128xf32>
    %130 = arith.addf %129, %128 : vector<2x128xf32>
    %131 = arith.divf %129, %130 : vector<2x128xf32>
    %132 = math.tanh %126 : vector<2x128xf32>
    %133 = vector.extract_strided_slice %131 {offsets = [0, 0], sizes = [2, 32], strides = [1, 1]} : vector<2x128xf32> to vector<2x32xf32>
    %134 = vector.extract_strided_slice %131 {offsets = [0, 32], sizes = [2, 32], strides = [1, 1]} : vector<2x128xf32> to vector<2x32xf32>
    %135 = vector.extract_strided_slice %132 {offsets = [0, 64], sizes = [2, 32], strides = [1, 1]} : vector<2x128xf32> to vector<2x32xf32>
    %136 = vector.extract_strided_slice %131 {offsets = [0, 96], sizes = [2, 32], strides = [1, 1]} : vector<2x128xf32> to vector<2x32xf32>
    %137 = arith.mulf %134, %101 : vector<2x32xf32>
    %138 = arith.mulf %133, %135 : vector<2x32xf32>
    %139 = arith.addf %137, %138 : vector<2x32xf32>
    %140 = math.tanh %139 : vector<2x32xf32>
    %141 = arith.mulf %136, %140 : vector<2x32xf32>
    %142 = math.tanh %141 : vector<2x32xf32>
    %143 = tpu.concatenate %142, %123 in 1 : vector<2x32xf32>, vector<2x32xf32> -> vector<2x64xf32>
    %cst_26 = arith.constant dense<0.000000e+00> : vector<2x128xf32>
    %144 = tpu.matmul %143, %2, %cst_26 {dimension_numbers = #tpu.dot_dimension_numbers<[1], [0], [0], [1], [0, 0, 1, 1], [], []>} : vector<2x64xf32>, vector<64x128xf32>, vector<2x128xf32> -> vector<2x128xf32>
    %145 = vector.broadcast %3 : vector<1x128xf32> to vector<2x128xf32>
    %146 = arith.addf %144, %145 : vector<2x128xf32>
    %147 = arith.negf %146 : vector<2x128xf32>
    %148 = math.exp %147 : vector<2x128xf32>
    %cst_27 = arith.constant 1.000000e+00 : f32
    %149 = vector.broadcast %cst_27 : f32 to vector<2x128xf32>
    %150 = arith.addf %149, %148 : vector<2x128xf32>
    %151 = arith.divf %149, %150 : vector<2x128xf32>
    %152 = math.tanh %146 : vector<2x128xf32>
    %153 = vector.extract_strided_slice %151 {offsets = [0, 0], sizes = [2, 32], strides = [1, 1]} : vector<2x128xf32> to vector<2x32xf32>
    %154 = vector.extract_strided_slice %151 {offsets = [0, 32], sizes = [2, 32], strides = [1, 1]} : vector<2x128xf32> to vector<2x32xf32>
    %155 = vector.extract_strided_slice %152 {offsets = [0, 64], sizes = [2, 32], strides = [1, 1]} : vector<2x128xf32> to vector<2x32xf32>
    %156 = vector.extract_strided_slice %151 {offsets = [0, 96], sizes = [2, 32], strides = [1, 1]} : vector<2x128xf32> to vector<2x32xf32>
    %157 = arith.mulf %154, %121 : vector<2x32xf32>
    %158 = arith.mulf %153, %155 : vector<2x32xf32>
    %159 = arith.addf %157, %158 : vector<2x32xf32>
    %160 = math.tanh %159 : vector<2x32xf32>
    %161 = arith.mulf %156, %160 : vector<2x32xf32>
    %162 = vector.extract_strided_slice %8 {offsets = [8, 0], sizes = [2, 128], strides = [1, 1]} : vector<16x128xf32> to vector<2x128xf32>
    %cst_28 = arith.constant dense<0.000000e+00> : vector<2x128xf32>
    %163 = tpu.matmul %141, %0, %cst_28 {dimension_numbers = #tpu.dot_dimension_numbers<[1], [0], [0], [1], [0, 0, 1, 1], [], []>} : vector<2x32xf32>, vector<32x128xf32>, vector<2x128xf32> -> vector<2x128xf32>
    %164 = arith.addf %162, %163 : vector<2x128xf32>
    %165 = arith.negf %164 : vector<2x128xf32>
    %166 = math.exp %165 : vector<2x128xf32>
    %cst_29 = arith.constant 1.000000e+00 : f32
    %167 = vector.broadcast %cst_29 : f32 to vector<2x128xf32>
    %168 = arith.addf %167, %166 : vector<2x128xf32>
    %169 = arith.divf %167, %168 : vector<2x128xf32>
    %170 = math.tanh %164 : vector<2x128xf32>
    %171 = vector.extract_strided_slice %169 {offsets = [0, 0], sizes = [2, 32], strides = [1, 1]} : vector<2x128xf32> to vector<2x32xf32>
    %172 = vector.extract_strided_slice %169 {offsets = [0, 32], sizes = [2, 32], strides = [1, 1]} : vector<2x128xf32> to vector<2x32xf32>
    %173 = vector.extract_strided_slice %170 {offsets = [0, 64], sizes = [2, 32], strides = [1, 1]} : vector<2x128xf32> to vector<2x32xf32>
    %174 = vector.extract_strided_slice %169 {offsets = [0, 96], sizes = [2, 32], strides = [1, 1]} : vector<2x128xf32> to vector<2x32xf32>
    %175 = arith.mulf %172, %139 : vector<2x32xf32>
    %176 = arith.mulf %171, %173 : vector<2x32xf32>
    %177 = arith.addf %175, %176 : vector<2x32xf32>
    %178 = math.tanh %177 : vector<2x32xf32>
    %179 = arith.mulf %174, %178 : vector<2x32xf32>
    %180 = math.tanh %179 : vector<2x32xf32>
    %181 = tpu.concatenate %180, %161 in 1 : vector<2x32xf32>, vector<2x32xf32> -> vector<2x64xf32>
    %cst_30 = arith.constant dense<0.000000e+00> : vector<2x128xf32>
    %182 = tpu.matmul %181, %2, %cst_30 {dimension_numbers = #tpu.dot_dimension_numbers<[1], [0], [0], [1], [0, 0, 1, 1], [], []>} : vector<2x64xf32>, vector<64x128xf32>, vector<2x128xf32> -> vector<2x128xf32>
    %183 = vector.broadcast %3 : vector<1x128xf32> to vector<2x128xf32>
    %184 = arith.addf %182, %183 : vector<2x128xf32>
    %185 = arith.negf %184 : vector<2x128xf32>
    %186 = math.exp %185 : vector<2x128xf32>
    %cst_31 = arith.constant 1.000000e+00 : f32
    %187 = vector.broadcast %cst_31 : f32 to vector<2x128xf32>
    %188 = arith.addf %187, %186 : vector<2x128xf32>
    %189 = arith.divf %187, %188 : vector<2x128xf32>
    %190 = math.tanh %184 : vector<2x128xf32>
    %191 = vector.extract_strided_slice %189 {offsets = [0, 0], sizes = [2, 32], strides = [1, 1]} : vector<2x128xf32> to vector<2x32xf32>
    %192 = vector.extract_strided_slice %189 {offsets = [0, 32], sizes = [2, 32], strides = [1, 1]} : vector<2x128xf32> to vector<2x32xf32>
    %193 = vector.extract_strided_slice %190 {offsets = [0, 64], sizes = [2, 32], strides = [1, 1]} : vector<2x128xf32> to vector<2x32xf32>
    %194 = vector.extract_strided_slice %189 {offsets = [0, 96], sizes = [2, 32], strides = [1, 1]} : vector<2x128xf32> to vector<2x32xf32>
    %195 = arith.mulf %192, %159 : vector<2x32xf32>
    %196 = arith.mulf %191, %193 : vector<2x32xf32>
    %197 = arith.addf %195, %196 : vector<2x32xf32>
    %198 = math.tanh %197 : vector<2x32xf32>
    %199 = arith.mulf %194, %198 : vector<2x32xf32>
    %200 = vector.extract_strided_slice %8 {offsets = [10, 0], sizes = [2, 128], strides = [1, 1]} : vector<16x128xf32> to vector<2x128xf32>
    %cst_32 = arith.constant dense<0.000000e+00> : vector<2x128xf32>
    %201 = tpu.matmul %179, %0, %cst_32 {dimension_numbers = #tpu.dot_dimension_numbers<[1], [0], [0], [1], [0, 0, 1, 1], [], []>} : vector<2x32xf32>, vector<32x128xf32>, vector<2x128xf32> -> vector<2x128xf32>
    %202 = arith.addf %200, %201 : vector<2x128xf32>
    %203 = arith.negf %202 : vector<2x128xf32>
    %204 = math.exp %203 : vector<2x128xf32>
    %cst_33 = arith.constant 1.000000e+00 : f32
    %205 = vector.broadcast %cst_33 : f32 to vector<2x128xf32>
    %206 = arith.addf %205, %204 : vector<2x128xf32>
    %207 = arith.divf %205, %206 : vector<2x128xf32>
    %208 = math.tanh %202 : vector<2x128xf32>
    %209 = vector.extract_strided_slice %207 {offsets = [0, 0], sizes = [2, 32], strides = [1, 1]} : vector<2x128xf32> to vector<2x32xf32>
    %210 = vector.extract_strided_slice %207 {offsets = [0, 32], sizes = [2, 32], strides = [1, 1]} : vector<2x128xf32> to vector<2x32xf32>
    %211 = vector.extract_strided_slice %208 {offsets = [0, 64], sizes = [2, 32], strides = [1, 1]} : vector<2x128xf32> to vector<2x32xf32>
    %212 = vector.extract_strided_slice %207 {offsets = [0, 96], sizes = [2, 32], strides = [1, 1]} : vector<2x128xf32> to vector<2x32xf32>
    %213 = arith.mulf %210, %177 : vector<2x32xf32>
    %214 = arith.mulf %209, %211 : vector<2x32xf32>
    %215 = arith.addf %213, %214 : vector<2x32xf32>
    %216 = math.tanh %215 : vector<2x32xf32>
    %217 = arith.mulf %212, %216 : vector<2x32xf32>
    %218 = math.tanh %217 : vector<2x32xf32>
    %219 = tpu.concatenate %218, %199 in 1 : vector<2x32xf32>, vector<2x32xf32> -> vector<2x64xf32>
    %cst_34 = arith.constant dense<0.000000e+00> : vector<2x128xf32>
    %220 = tpu.matmul %219, %2, %cst_34 {dimension_numbers = #tpu.dot_dimension_numbers<[1], [0], [0], [1], [0, 0, 1, 1], [], []>} : vector<2x64xf32>, vector<64x128xf32>, vector<2x128xf32> -> vector<2x128xf32>
    %221 = vector.broadcast %3 : vector<1x128xf32> to vector<2x128xf32>
    %222 = arith.addf %220, %221 : vector<2x128xf32>
    %223 = arith.negf %222 : vector<2x128xf32>
    %224 = math.exp %223 : vector<2x128xf32>
    %cst_35 = arith.constant 1.000000e+00 : f32
    %225 = vector.broadcast %cst_35 : f32 to vector<2x128xf32>
    %226 = arith.addf %225, %224 : vector<2x128xf32>
    %227 = arith.divf %225, %226 : vector<2x128xf32>
    %228 = math.tanh %222 : vector<2x128xf32>
    %229 = vector.extract_strided_slice %227 {offsets = [0, 0], sizes = [2, 32], strides = [1, 1]} : vector<2x128xf32> to vector<2x32xf32>
    %230 = vector.extract_strided_slice %227 {offsets = [0, 32], sizes = [2, 32], strides = [1, 1]} : vector<2x128xf32> to vector<2x32xf32>
    %231 = vector.extract_strided_slice %228 {offsets = [0, 64], sizes = [2, 32], strides = [1, 1]} : vector<2x128xf32> to vector<2x32xf32>
    %232 = vector.extract_strided_slice %227 {offsets = [0, 96], sizes = [2, 32], strides = [1, 1]} : vector<2x128xf32> to vector<2x32xf32>
    %233 = arith.mulf %230, %197 : vector<2x32xf32>
    %234 = arith.mulf %229, %231 : vector<2x32xf32>
    %235 = arith.addf %233, %234 : vector<2x32xf32>
    %236 = math.tanh %235 : vector<2x32xf32>
    %237 = arith.mulf %232, %236 : vector<2x32xf32>
    %238 = vector.extract_strided_slice %8 {offsets = [12, 0], sizes = [2, 128], strides = [1, 1]} : vector<16x128xf32> to vector<2x128xf32>
    %cst_36 = arith.constant dense<0.000000e+00> : vector<2x128xf32>
    %239 = tpu.matmul %217, %0, %cst_36 {dimension_numbers = #tpu.dot_dimension_numbers<[1], [0], [0], [1], [0, 0, 1, 1], [], []>} : vector<2x32xf32>, vector<32x128xf32>, vector<2x128xf32> -> vector<2x128xf32>
    %240 = arith.addf %238, %239 : vector<2x128xf32>
    %241 = arith.negf %240 : vector<2x128xf32>
    %242 = math.exp %241 : vector<2x128xf32>
    %cst_37 = arith.constant 1.000000e+00 : f32
    %243 = vector.broadcast %cst_37 : f32 to vector<2x128xf32>
    %244 = arith.addf %243, %242 : vector<2x128xf32>
    %245 = arith.divf %243, %244 : vector<2x128xf32>
    %246 = math.tanh %240 : vector<2x128xf32>
    %247 = vector.extract_strided_slice %245 {offsets = [0, 0], sizes = [2, 32], strides = [1, 1]} : vector<2x128xf32> to vector<2x32xf32>
    %248 = vector.extract_strided_slice %245 {offsets = [0, 32], sizes = [2, 32], strides = [1, 1]} : vector<2x128xf32> to vector<2x32xf32>
    %249 = vector.extract_strided_slice %246 {offsets = [0, 64], sizes = [2, 32], strides = [1, 1]} : vector<2x128xf32> to vector<2x32xf32>
    %250 = vector.extract_strided_slice %245 {offsets = [0, 96], sizes = [2, 32], strides = [1, 1]} : vector<2x128xf32> to vector<2x32xf32>
    %251 = arith.mulf %248, %215 : vector<2x32xf32>
    %252 = arith.mulf %247, %249 : vector<2x32xf32>
    %253 = arith.addf %251, %252 : vector<2x32xf32>
    %254 = math.tanh %253 : vector<2x32xf32>
    %255 = arith.mulf %250, %254 : vector<2x32xf32>
    %256 = math.tanh %255 : vector<2x32xf32>
    %257 = tpu.concatenate %256, %237 in 1 : vector<2x32xf32>, vector<2x32xf32> -> vector<2x64xf32>
    %cst_38 = arith.constant dense<0.000000e+00> : vector<2x128xf32>
    %258 = tpu.matmul %257, %2, %cst_38 {dimension_numbers = #tpu.dot_dimension_numbers<[1], [0], [0], [1], [0, 0, 1, 1], [], []>} : vector<2x64xf32>, vector<64x128xf32>, vector<2x128xf32> -> vector<2x128xf32>
    %259 = vector.broadcast %3 : vector<1x128xf32> to vector<2x128xf32>
    %260 = arith.addf %258, %259 : vector<2x128xf32>
    %261 = arith.negf %260 : vector<2x128xf32>
    %262 = math.exp %261 : vector<2x128xf32>
    %cst_39 = arith.constant 1.000000e+00 : f32
    %263 = vector.broadcast %cst_39 : f32 to vector<2x128xf32>
    %264 = arith.addf %263, %262 : vector<2x128xf32>
    %265 = arith.divf %263, %264 : vector<2x128xf32>
    %266 = math.tanh %260 : vector<2x128xf32>
    %267 = vector.extract_strided_slice %265 {offsets = [0, 0], sizes = [2, 32], strides = [1, 1]} : vector<2x128xf32> to vector<2x32xf32>
    %268 = vector.extract_strided_slice %265 {offsets = [0, 32], sizes = [2, 32], strides = [1, 1]} : vector<2x128xf32> to vector<2x32xf32>
    %269 = vector.extract_strided_slice %266 {offsets = [0, 64], sizes = [2, 32], strides = [1, 1]} : vector<2x128xf32> to vector<2x32xf32>
    %270 = vector.extract_strided_slice %265 {offsets = [0, 96], sizes = [2, 32], strides = [1, 1]} : vector<2x128xf32> to vector<2x32xf32>
    %271 = arith.mulf %268, %235 : vector<2x32xf32>
    %272 = arith.mulf %267, %269 : vector<2x32xf32>
    %273 = arith.addf %271, %272 : vector<2x32xf32>
    %274 = math.tanh %273 : vector<2x32xf32>
    %275 = arith.mulf %270, %274 : vector<2x32xf32>
    %276 = vector.extract_strided_slice %8 {offsets = [14, 0], sizes = [2, 128], strides = [1, 1]} : vector<16x128xf32> to vector<2x128xf32>
    %cst_40 = arith.constant dense<0.000000e+00> : vector<2x128xf32>
    %277 = tpu.matmul %255, %0, %cst_40 {dimension_numbers = #tpu.dot_dimension_numbers<[1], [0], [0], [1], [0, 0, 1, 1], [], []>} : vector<2x32xf32>, vector<32x128xf32>, vector<2x128xf32> -> vector<2x128xf32>
    %278 = arith.addf %276, %277 : vector<2x128xf32>
    %279 = arith.negf %278 : vector<2x128xf32>
    %280 = math.exp %279 : vector<2x128xf32>
    %cst_41 = arith.constant 1.000000e+00 : f32
    %281 = vector.broadcast %cst_41 : f32 to vector<2x128xf32>
    %282 = arith.addf %281, %280 : vector<2x128xf32>
    %283 = arith.divf %281, %282 : vector<2x128xf32>
    %284 = math.tanh %278 : vector<2x128xf32>
    %285 = vector.extract_strided_slice %283 {offsets = [0, 0], sizes = [2, 32], strides = [1, 1]} : vector<2x128xf32> to vector<2x32xf32>
    %286 = vector.extract_strided_slice %283 {offsets = [0, 32], sizes = [2, 32], strides = [1, 1]} : vector<2x128xf32> to vector<2x32xf32>
    %287 = vector.extract_strided_slice %284 {offsets = [0, 64], sizes = [2, 32], strides = [1, 1]} : vector<2x128xf32> to vector<2x32xf32>
    %288 = vector.extract_strided_slice %283 {offsets = [0, 96], sizes = [2, 32], strides = [1, 1]} : vector<2x128xf32> to vector<2x32xf32>
    %289 = arith.mulf %286, %253 : vector<2x32xf32>
    %290 = arith.mulf %285, %287 : vector<2x32xf32>
    %291 = arith.addf %289, %290 : vector<2x32xf32>
    %292 = math.tanh %291 : vector<2x32xf32>
    %293 = arith.mulf %288, %292 : vector<2x32xf32>
    %294 = math.tanh %293 : vector<2x32xf32>
    %295 = tpu.concatenate %294, %275 in 1 : vector<2x32xf32>, vector<2x32xf32> -> vector<2x64xf32>
    %cst_42 = arith.constant dense<0.000000e+00> : vector<2x128xf32>
    %296 = tpu.matmul %295, %2, %cst_42 {dimension_numbers = #tpu.dot_dimension_numbers<[1], [0], [0], [1], [0, 0, 1, 1], [], []>} : vector<2x64xf32>, vector<64x128xf32>, vector<2x128xf32> -> vector<2x128xf32>
    %297 = vector.broadcast %3 : vector<1x128xf32> to vector<2x128xf32>
    %298 = arith.addf %296, %297 : vector<2x128xf32>
    %299 = arith.negf %298 : vector<2x128xf32>
    %300 = math.exp %299 : vector<2x128xf32>
    %cst_43 = arith.constant 1.000000e+00 : f32
    %301 = vector.broadcast %cst_43 : f32 to vector<2x128xf32>
    %302 = arith.addf %301, %300 : vector<2x128xf32>
    %303 = arith.divf %301, %302 : vector<2x128xf32>
    %304 = math.tanh %298 : vector<2x128xf32>
    %305 = vector.extract_strided_slice %303 {offsets = [0, 0], sizes = [2, 32], strides = [1, 1]} : vector<2x128xf32> to vector<2x32xf32>
    %306 = vector.extract_strided_slice %303 {offsets = [0, 32], sizes = [2, 32], strides = [1, 1]} : vector<2x128xf32> to vector<2x32xf32>
    %307 = vector.extract_strided_slice %304 {offsets = [0, 64], sizes = [2, 32], strides = [1, 1]} : vector<2x128xf32> to vector<2x32xf32>
    %308 = vector.extract_strided_slice %303 {offsets = [0, 96], sizes = [2, 32], strides = [1, 1]} : vector<2x128xf32> to vector<2x32xf32>
    %309 = arith.mulf %306, %273 : vector<2x32xf32>
    %310 = arith.mulf %305, %307 : vector<2x32xf32>
    %311 = arith.addf %309, %310 : vector<2x32xf32>
    %312 = math.tanh %311 : vector<2x32xf32>
    %313 = arith.mulf %308, %312 : vector<2x32xf32>
    %314 = math.tanh %313 : vector<2x32xf32>
    %cst_44 = arith.constant dense<0.000000e+00> : vector<32xf32>
    %315 = vector.multi_reduction <add>, %314, %cst_44 [0] : vector<2x32xf32> to vector<32xf32>
    %316 = vector.shape_cast %315 : vector<32xf32> to vector<1x32xf32>
    %cst_45 = arith.constant 2.000000e+00 : f32
    %317 = vector.broadcast %cst_45 : f32 to vector<1x32xf32>
    %318 = arith.divf %316, %317 : vector<1x32xf32>
    %319 = vector.broadcast %318 : vector<1x32xf32> to vector<2x32xf32>
    %320 = arith.subf %314, %319 : vector<2x32xf32>
    %321 = arith.mulf %320, %320 : vector<2x32xf32>
    %cst_46 = arith.constant dense<0.000000e+00> : vector<32xf32>
    %322 = vector.multi_reduction <add>, %321, %cst_46 [0] : vector<2x32xf32> to vector<32xf32>
    %323 = vector.shape_cast %322 : vector<32xf32> to vector<1x32xf32>
    %cst_47 = arith.constant 2.000000e+00 : f32
    %324 = vector.broadcast %cst_47 : f32 to vector<1x32xf32>
    %325 = arith.divf %323, %324 : vector<1x32xf32>
    %326 = vector.broadcast %318 : vector<1x32xf32> to vector<2x32xf32>
    %327 = arith.subf %314, %326 : vector<2x32xf32>
    %cst_48 = arith.constant 9.99999974E-6 : f32
    %328 = vector.broadcast %cst_48 : f32 to vector<1x32xf32>
    %329 = arith.addf %325, %328 : vector<1x32xf32>
    %330 = math.rsqrt %329 : vector<1x32xf32>
    %331 = vector.broadcast %330 : vector<1x32xf32> to vector<2x32xf32>
    %332 = arith.mulf %327, %331 : vector<2x32xf32>
    %c0_49 = arith.constant 0 : index
    %c0_50 = arith.constant 0 : index
    %333 = vector.load %arg6[%c0_49, %c0_50] : memref<1x32xf32, #tpu.memory_space<vmem>>, vector<1x32xf32>
    %334 = vector.broadcast %333 : vector<1x32xf32> to vector<2x32xf32>
    %335 = arith.mulf %332, %334 : vector<2x32xf32>
    %c0_51 = arith.constant 0 : index
    %c0_52 = arith.constant 0 : index
    %336 = vector.load %arg7[%c0_51, %c0_52] : memref<1x32xf32, #tpu.memory_space<vmem>>, vector<1x32xf32>
    %337 = vector.broadcast %336 : vector<1x32xf32> to vector<2x32xf32>
    %338 = arith.addf %335, %337 : vector<2x32xf32>
    %c0_53 = arith.constant 0 : index
    %c0_54 = arith.constant 0 : index
    %339 = vector.load %arg8[%c0_53, %c0_54] : memref<32x32xf32, #tpu.memory_space<vmem>>, vector<32x32xf32>
    %cst_55 = arith.constant dense<0.000000e+00> : vector<2x32xf32>
    %340 = tpu.matmul %338, %339, %cst_55 {dimension_numbers = #tpu.dot_dimension_numbers<[1], [0], [0], [1], [0, 0, 1, 1], [], []>} : vector<2x32xf32>, vector<32x32xf32>, vector<2x32xf32> -> vector<2x32xf32>
    %c0_56 = arith.constant 0 : index
    %c0_57 = arith.constant 0 : index
    %341 = vector.load %arg9[%c0_56, %c0_57] : memref<1x32xf32, #tpu.memory_space<vmem>>, vector<1x32xf32>
    %342 = vector.broadcast %341 : vector<1x32xf32> to vector<2x32xf32>
    %343 = arith.addf %340, %342 : vector<2x32xf32>
    %cst_58 = arith.constant 0.000000e+00 : f32
    %344 = vector.broadcast %cst_58 : f32 to vector<2x32xf32>
    %345 = arith.maximumf %343, %344 : vector<2x32xf32>
    %c0_59 = arith.constant 0 : index
    %c0_60 = arith.constant 0 : index
    %346 = vector.load %arg10[%c0_59, %c0_60] : memref<32x4xf32, #tpu.memory_space<vmem>>, vector<32x4xf32>
    %cst_61 = arith.constant dense<0.000000e+00> : vector<2x4xf32>
    %347 = tpu.matmul %345, %346, %cst_61 {dimension_numbers = #tpu.dot_dimension_numbers<[1], [0], [0], [1], [0, 0, 1, 1], [], []>} : vector<2x32xf32>, vector<32x4xf32>, vector<2x4xf32> -> vector<2x4xf32>
    %c0_62 = arith.constant 0 : index
    %c0_63 = arith.constant 0 : index
    %348 = vector.load %arg11[%c0_62, %c0_63] : memref<1x4xf32, #tpu.memory_space<vmem>>, vector<1x4xf32>
    %349 = vector.broadcast %348 : vector<1x4xf32> to vector<2x4xf32>
    %350 = arith.addf %347, %349 : vector<2x4xf32>
    %351 = arith.negf %350 : vector<2x4xf32>
    %352 = math.exp %351 : vector<2x4xf32>
    %cst_64 = arith.constant 1.000000e+00 : f32
    %353 = vector.broadcast %cst_64 : f32 to vector<2x4xf32>
    %354 = arith.addf %353, %352 : vector<2x4xf32>
    %355 = arith.divf %353, %354 : vector<2x4xf32>
    %c0_65 = arith.constant 0 : index
    %c0_66 = arith.constant 0 : index
    %356 = vector.load %arg12[%c0_65, %c0_66] : memref<2x4xf32, #tpu.memory_space<vmem>>, vector<2x4xf32>
    tpu.vector_store %arg12[%c0_65, %c0_66], %355 {strides = array<i32>} : memref<2x4xf32, #tpu.memory_space<vmem>>, vector<2x4xf32>,
    return
  }
}

</mosaic_0001>

<bundles_post_ra>
// kernel: tpu_custom_call.1
= control target key start
LH: loop header
LB: loop body
LE: loop exit
PB: predicated region body
PF: predicated region fallthrough
CT: control target
= control target key end

     0   :  { %17 = vsyncpa [#allocation3], 0  ;;  %s3672_s0 = inlined_call_operand.hbm [shape: f32[16,32], index: 0, kind: input, shape index: {}]   ;;  %s3673_s1 = inlined_call_operand.vmem [shape: f32[32,128], index: 1, kind: input, shape index: {}]   ;;  %s3674_s2 = inlined_call_operand.hbm [shape: f32[32,128], index: 2, kind: input, shape index: {}]   ;;  %s3675_s3 = inlined_call_operand.vmem [shape: f32[1,128], index: 3, kind: input, shape index: {}]   ;;  %s3676_s4 = inlined_call_operand.hbm [shape: f32[64,128], index: 4, kind: input, shape index: {}]   ;;  %s3677_s5 = inlined_call_operand.vmem [shape: f32[1,128], index: 5, kind: input, shape index: {}]   ;;  %s3678_s6 = inlined_call_operand.hbm [shape: f32[1,32], index: 6, kind: input, shape index: {}]   ;;  %s3679_s7 = inlined_call_operand.hbm [shape: f32[1,32], index: 7, kind: input, shape index: {}]   ;;  %s3680_s8 = inlined_call_operand.vmem [shape: f32[32,32], index: 8, kind: input, shape index: {}]   ;;  %s3681_s9 = inlined_call_operand.hbm [shape: f32[1,32], index: 9, kind: input, shape index: {}]   ;;  %s3682_s10 = inlined_call_operand.vmem [shape: f32[32,4], index: 10, kind: input, shape index: {}]   ;;  %s3683_s11 = inlined_call_operand.vmem [shape: f32[1,4], index: 11, kind: input, shape index: {}]   ;;  %s3684_s12 = inlined_call_operand.hbm [shape: f32[2,4], index: 12, kind: output, shape index: {}]  }
   0x1   :  { %18 = vsyncpa [#allocation6], 0 }
   0x2   :  { %19 = vsyncpa [#allocation9], 0 }
   0x3   :  { %20 = vsyncpa [#allocation12], 0 }
   0x4   :  { %21 = vsyncpa [#allocation4], 0  ;;  %s3118_s21 = smov [#allocation5]   ;;  %s3119_s23 = smov [#allocation8]  }
   0x5   :  { %s41_s22 = sshll.u32 %s3118_s21, 4  ;;  %s70_s24 = sshll.u32 %s3119_s23, 4  ;;  %s42_s22 = int_to_ptr.vmem [resolvable:$true] %s41_s22  ;;  %s3198_s24 = int_to_ptr.vmem [resolvable:$true] %s70_s24 }
   0x6   :  { %s2954_s27 = scalar_lea.hbm %s3674_s2, 512 }
   0x7   :  { %p2955_p0 = scmp.ne.s32.totalorder %s3674_s2, %s2954_s27  ;;  %p2958_p1 = scmp.lt.u32.totalorder %s2954_s27, %s3674_s2 }
   0x9   :  { %p2960_p2 = pnand %p2958_p1, %p2955_p0 }
   0xb   :  { %2963 = shalt.err (!%p2960_p2)
}
   0xc   :  { %s2964_s14 = scalar_lea.vmem %s42_s22, 512  ;;  %p2969_p4 = scmp.lt.s32.totalorder %s42_s22, %s42_s22 }
   0xd   :  { %p2965_p3 = scmp.ne.s32.totalorder %s42_s22, %s2964_s14  ;;  %p2970_p5 = scmp.lt.s32.totalorder %s2964_s14, %s2964_s14 }
   0xf   :  { %p2971_p6 = por %p2970_p5, %p2969_p4 }
  0x11   :  { %p2972_p7 = pnand %p2971_p6, %p2965_p3 }
  0x13   :  { %2975 = shalt.err (!%p2972_p7)
}
  0x14   :  { %s3120_s15 = smov 128   ;;  %s3121_s16 = smov 8  }
  0x15   :  { %47 = dma.hbm_to_vmem [thread:$0]  %s3674_s2, 512, %s42_s22, [#allocation6], %s3120_s15, %s3120_s15, %s3121_s16  }
  0x16   :  { %s2976_s21 = scalar_lea.hbm %s3678_s6, 16 }
  0x17   :  { %p2977_p8 = scmp.ne.s32.totalorder %s3678_s6, %s2976_s21  ;;  %p2980_p9 = scmp.lt.u32.totalorder %s2976_s21, %s3678_s6 }
  0x19   :  { %p2982_p10 = pnand %p2980_p9, %p2977_p8 }
  0x1b   :  { %2985 = shalt.err (!%p2982_p10)
}
  0x1c   :  { %s2986_s28 = scalar_lea.vmem %s3198_s24, 16  ;;  %s2990_s2 = scalar_lea.vmem %s3198_s24, 32 }
  0x1d   :  { %p2987_p11 = scmp.ne.s32.totalorder %s3198_s24, %s2986_s28  ;;  %p2991_p12 = scmp.lt.s32.totalorder %s3198_s24, %s3198_s24 }
  0x1e   :  { %p2992_p13 = scmp.lt.s32.totalorder %s2990_s2, %s2986_s28 }
  0x20   :  { %p2993_p0 = por %p2992_p13, %p2991_p12 }
  0x22   :  { %p2994_p1 = pnand %p2993_p0, %p2987_p11 }
  0x24   :  { %2997 = shalt.err (!%p2994_p1)
}
  0x25   :  { %73 = dma.hbm_to_vmem [thread:$0]  %s3678_s6, 16, %s3198_s24, [#allocation9]  }
  0x26   :  { %s3122_s30 = smov [#allocation2]   ;;  %s3123_s14 = smov [#allocation7]  }
  0x27   :  { %s27_s13 = sshll.u32 %s3122_s30, 4  ;;  %s55_s17 = sshll.u32 %s3123_s14, 4  ;;  %s28_s13 = int_to_ptr.vmem [resolvable:$true] %s27_s13  ;;  %s3233_s17 = int_to_ptr.vmem [resolvable:$true] %s55_s17 }
  0x28   :  { %s2998_s20 = scalar_lea.hbm %s3672_s0, 256 }
  0x29   :  { %p2999_p2 = scmp.ne.s32.totalorder %s3672_s0, %s2998_s20  ;;  %p3002_p3 = scmp.lt.u32.totalorder %s2998_s20, %s3672_s0 }
  0x2b   :  { %p3004_p4 = pnand %p3002_p3, %p2999_p2 }
  0x2d   :  { %3007 = shalt.err (!%p3004_p4)
}
  0x2e   :  { %s3008_s6 = scalar_lea.vmem %s28_s13, 256  ;;  %p3013_p6 = scmp.lt.s32.totalorder %s28_s13, %s28_s13 }
  0x2f   :  { %p3009_p5 = scmp.ne.s32.totalorder %s28_s13, %s3008_s6  ;;  %p3014_p7 = scmp.lt.s32.totalorder %s3008_s6, %s3008_s6 }
  0x31   :  { %p3015_p8 = por %p3014_p7, %p3013_p6 }
  0x33   :  { %p3016_p9 = pnand %p3015_p8, %p3009_p5 }
  0x35   :  { %3019 = shalt.err (!%p3016_p9)
}
  0x36   :  { %33 = dma.hbm_to_vmem [thread:$0]  %s3672_s0, 256, %s28_s13, [#allocation3], %s3120_s15, %s3120_s15, %s3121_s16  }
  0x37   :  { %s3020_s22 = scalar_lea.hbm %s3676_s4, 1024 }
  0x38   :  { %p3021_p10 = scmp.ne.s32.totalorder %s3676_s4, %s3020_s22  ;;  %p3024_p11 = scmp.lt.u32.totalorder %s3020_s22, %s3676_s4 }
  0x3a   :  { %p3026_p12 = pnand %p3024_p11, %p3021_p10 }
  0x3c   :  { %3029 = shalt.err (!%p3026_p12)
}
  0x3d   :  { %s3030_s19 = scalar_lea.vmem %s3233_s17, 1024  ;;  %p3035_p0 = scmp.lt.s32.totalorder %s3233_s17, %s3233_s17 }
  0x3e   :  { %p3031_p13 = scmp.ne.s32.totalorder %s3233_s17, %s3030_s19  ;;  %p3036_p1 = scmp.lt.s32.totalorder %s3030_s19, %s3030_s19 }
  0x40   :  { %p3037_p2 = por %p3036_p1, %p3035_p0 }
  0x42   :  { %p3038_p3 = pnand %p3037_p2, %p3031_p13 }
  0x44   :  { %3041 = shalt.err (!%p3038_p3)
}
  0x45   :  { %61 = dma.hbm_to_vmem [thread:$0]  %s3676_s4, 1024, %s3233_s17, [#allocation6], %s3120_s15, %s3120_s15, %s3121_s16  }
  0x46   :  { %s3124_s20 = smov [#allocation10]   ;;  %s3125_s23 = smov [#allocation11]  }
  0x47   :  { %s80_s21 = sshll.u32 %s3124_s20, 4  ;;  %s92_s25 = sshll.u32 %s3125_s23, 4  ;;  %s81_s21 = int_to_ptr.vmem [resolvable:$true] %s80_s21  ;;  %s93_s25 = int_to_ptr.vmem [resolvable:$true] %s92_s25 }
  0x48   :  { %s3042_s24 = scalar_lea.hbm %s3679_s7, 16 }
  0x49   :  { %p3043_p4 = scmp.ne.s32.totalorder %s3679_s7, %s3042_s24  ;;  %p3046_p5 = scmp.lt.u32.totalorder %s3042_s24, %s3679_s7 }
  0x4b   :  { %p3048_p6 = pnand %p3046_p5, %p3043_p4 }
  0x4d   :  { %3051 = shalt.err (!%p3048_p6)
}
  0x4e   :  { %s3052_s4 = scalar_lea.vmem %s81_s21, 16  ;;  %s3056_s15 = scalar_lea.vmem %s81_s21, 32 }
  0x4f   :  { %p3053_p7 = scmp.ne.s32.totalorder %s81_s21, %s3052_s4  ;;  %p3057_p8 = scmp.lt.s32.totalorder %s81_s21, %s81_s21 }
  0x50   :  { %p3058_p9 = scmp.lt.s32.totalorder %s3056_s15, %s3052_s4 }
  0x52   :  { %p3059_p10 = por %p3058_p9, %p3057_p8 }
  0x54   :  { %p3060_p11 = pnand %p3059_p10, %p3053_p7 }
  0x56   :  { %3063 = shalt.err (!%p3060_p11)
}
  0x57   :  { %83 = dma.hbm_to_vmem [thread:$0]  %s3679_s7, 16, %s81_s21, [#allocation9]  }
  0x58   :  { %s3064_s14 = scalar_lea.hbm %s3681_s9, 16 }
  0x59   :  { %p3065_p12 = scmp.ne.s32.totalorder %s3681_s9, %s3064_s14  ;;  %p3068_p13 = scmp.lt.u32.totalorder %s3064_s14, %s3681_s9 }
  0x5b   :  { %p3070_p0 = pnand %p3068_p13, %p3065_p12 }
  0x5d   :  { %3073 = shalt.err (!%p3070_p0)
}
  0x5e   :  { %s3074_s20 = scalar_lea.vmem %s93_s25, 16  ;;  %s3078_s23 = scalar_lea.vmem %s93_s25, 32 }
  0x5f   :  { %p3075_p1 = scmp.ne.s32.totalorder %s93_s25, %s3074_s20  ;;  %p3079_p2 = scmp.lt.s32.totalorder %s93_s25, %s93_s25 }
  0x60   :  { %p3080_p3 = scmp.lt.s32.totalorder %s3078_s23, %s3074_s20 }
  0x62   :  { %p3081_p4 = por %p3080_p3, %p3079_p2 }
  0x64   :  { %p3082_p5 = pnand %p3081_p4, %p3075_p1 }
  0x66   :  { %3085 = shalt.err (!%p3082_p5)
}
  0x67   :  { %95 = dma.hbm_to_vmem [thread:$0]  %s3681_s9, 16, %s93_s25, [#allocation12]  }
  0x68   :  { %3108 = dma.done.wait [#allocation3], 256  }
  0x69   :  { %3109 = vsyncadd [#allocation3], 4294967040 }
  0x6a   :  { %3110 = dma.done.wait [#allocation6], 1536  }
  0x6b   :  { %3111 = vsyncadd [#allocation6], 4294965760 }
  0x6c   :  { %3112 = dma.done.wait [#allocation9], 32  }
  0x6d   :  { %3113 = vsyncadd [#allocation9], 4294967264 }
  0x6e   :  { %3114 = dma.done.wait [#allocation12], 16  }
  0x6f   :  { %3115 = vsyncadd [#allocation12], 4294967280  ;;  %v3126_v0 = vmov 0.0|0.0   ;;  %vm3127_vm0 = vmmov 0   ;;  %v3128_v1 = vmov 0.0   ;;  %v134_v2 = vld [vmem:[%s3673_s1] sm:$0xff] }
  0x70   :  { %2631 = vmatprep.subr.bf16.mxu1 %v3126_v0  ;;  %2369 = vmatprep.mubr.msk.f32.mxu1 %vm3127_vm0, %v3128_v1  ;;  %v135_v3 = vld [vmem:[%s3673_s1 + $0x8] sm:$0xff]  ;;  %v118_v4 = vld [vmem:[#allocation5] sm:$0xff]  ;;  %vm144_vm1 = vcmask 261120   ;;  %v119_v6 = vld [vmem:[#allocation5 + $0x8] sm:$0xff]  ;;  %s3129_s4 = smov 64   ;;  %vm336_vm2 = vcmask 523264  }
  0x71   :  { %v2623_v5 = vpack.c.bf16 %v135_v3, %v134_v2  ;;  %v136_v7 = vld [vmem:[%s3673_s1 + $0x10] sm:$0xff]  ;;  %v137_v8 = vld [vmem:[%s3673_s1 + $0x18] sm:$0xff]  ;;  %v3309_v9 = vpack.c.bf16 %v119_v6, %v118_v4  ;;  %v132_v11 = vld [vmem:[#allocation2] sm:$0xff]  ;;  %vm1940_vm3 = vcmask 1042176   ;;  %vm2160_vm4 = vcmask 25600  }
  0x72   :  { %v2627_v10 = vpack.c.bf16 %v137_v8, %v136_v7  ;;  %v120_v12 = vld [vmem:[#allocation5 + $0x10] sm:$0xff]  ;;  %v121_v13 = vld [vmem:[#allocation5 + $0x18] sm:$0xff]  ;;  %2358 = vmatprep.mubr.msk.f32.mxu0 %vm144_vm1, %v132_v11  ;;  %v123_v35 = vld [vmem:[#allocation7] sm:$0xff] }
  0x73   :  { %2624 = vmatprep.subr.bf16.mxu0 %v2623_v5  ;;  %2633 = vmatpush3.bf16.msra.mxu1 %v3309_v9  ;;  %v3313_v14 = vpack.c.bf16 %v121_v13, %v120_v12  ;;  %v133_v15 = vld [vmem:[#allocation2 + $0x8] sm:$0xff]  ;;  %v2180_v16 = vld [vmem:[%s3675_s3] ss:$0 sm:$0xff]  ;;  %s3130_s3 = smov 32   ;;  %v124_v36 = vld [vmem:[#allocation7 + $0x8] sm:$0xff] }
  0x74   :  { %2626 = vmatpush3.bf16.msra.mxu0 %v2623_v5  ;;  %2634 = vmatprep.subr.bf16.mxu1 %v3126_v0  ;;  %v3343_v37 = vpack.c.bf16 %v124_v36, %v123_v35  ;;  %v125_v38 = vld [vmem:[#allocation7 + $0x10] sm:$0xff]  ;;  %v126_v39 = vld [vmem:[#allocation7 + $0x18] sm:$0xff]  ;;  %v127_v41 = vld [vmem:[#allocation7 + $0x20] sm:$0xff] }
  0x75   :  { %2628 = vmatprep.subr.bf16.mxu0 %v2627_v10  ;;  %v3347_v40 = vpack.c.bf16 %v126_v39, %v125_v38  ;;  %v128_v42 = vld [vmem:[#allocation7 + $0x28] sm:$0xff]  ;;  %v129_v44 = vld [vmem:[#allocation7 + $0x30] sm:$0xff]  ;;  %v130_v45 = vld [vmem:[#allocation7 + $0x38] sm:$0xff] }
  0x76   :  { %v3350_v43 = vpack.c.bf16 %v128_v42, %v127_v41  ;;  %v3354_v46 = vpack.c.bf16 %v130_v45, %v129_v44  ;;  %v3384_v57 = vld [vmem:[%s3677_s5] ss:$0 sm:$0xff]  ;;  %s3131_s5 = smov 96  }
  0x77   :  { %2636 = vmatpush3.bf16.msra.mxu1 %v3313_v14 }
  0x78   :  { %2630 = vmatpush3.bf16.msra.mxu0 %v2627_v10  ;;  %2649 = vmatprep.subr.bf16.mxu1 %v3126_v0 }
  0x79   :  { %2637 = vmatprep.subr.bf16.mxu0 %v3126_v0 }
  0x7a   :  { %2370 = vmatmul.mubr.f32.vlgmr.msra.gmra.mrb[0].mxu1 %v3128_v1 }
  0x7b   :  { %2359 = vmatmul.mubr.msk.f32.vlgmr.msra.gmra.mrb[0].mxu0 %vm144_vm1, %v133_v15  ;;  %2651 = vmatpush3.bf16.msra.mxu1 %v3309_v9 }
  0x7c   :  { %2399 = vmatprep.mubr.msk.f32.mxu1 %vm3127_vm0, %v3128_v1  ;;  %2652 = vmatprep.subr.bf16.mxu1 %v3126_v0 }
  0x7d   :  { %2388 = vmatprep.mubr.msk.f32.mxu0 %vm3127_vm0, %v3128_v1  ;;  %2639 = vmatpush3.bf16.msra.mxu0 %v3343_v37 }
  0x7e   :  { %2640 = vmatprep.subr.bf16.mxu0 %v3126_v0 }
  0x7f   :  { %2654 = vmatpush3.bf16.msra.mxu1 %v3313_v14 }
  0x80   :  { %2655 = vmatprep.subr.bf16.mxu1 %v3126_v0 }
  0x81   :  { %2642 = vmatpush3.bf16.msra.mxu0 %v3347_v40 }
  0x82   :  { %2643 = vmatprep.subr.bf16.mxu0 %v3126_v0 }
  0x85   :  { %2645 = vmatpush3.bf16.msra.mxu0 %v3350_v43 }
  0x86   :  { %2646 = vmatprep.subr.bf16.mxu0 %v3126_v0 }
  0x89   :  { %2648 = vmatpush3.bf16.msra.mxu0 %v3354_v46 }
  0x8a   :  { %2667 = vmatprep.subr.bf16.mxu0 %v3126_v0 }
 0x14d   :  { %v295_v18 = vpop.f32.mrb[0].mxu1 }
 0x14e   :  { %v2360_v17 = vpop.f32.mrb[0].mxu0  ;;  %v2371_v21 = vpop.f32.mrb[1].mxu1 }
 0x14f   :  { %v3332_v19 = vadd.f32 %v2360_v17, %v2180_v16  ;;  %v217_v20 = vpop.f32.mrb[1].mxu0 }
 0x150   :  { %v3334_v22 = vadd.f32 %v2180_v16, %v217_v20 }
 0x152   :  { %v299_v23 = vadd.f32 %v295_v18, %v3334_v22 }
 0x154   :  { %2802 = vtanh.f32 %v299_v23  ;;  %v2183_v25 = vmul.f32 -1.442695, %v299_v23 }
 0x156   :  { %2804 = vpow2.f32 %v2183_v25 }
 0x15e   :  { %v2803_v24 = vpop.eup %2802 }
 0x15f   :  { %309 = vrot.lane.b32.xlu0 %v2803_v24, %s3129_s4 }
 0x160   :  { %v2805_v26 = vpop.eup %2804 }
 0x161   :  { %v303_v27 = vadd.f32 1.0, %v2805_v26 }
 0x163   :  { %2806 = vrcp.f32 %v303_v27 }
 0x16d   :  { %v2807_v28 = vpop.eup %2806 }
 0x16e   :  { %v307_v31 = vmul.f32 0.0, %v2807_v28 }
 0x1d1   :  { %v310_v29 = vpop.permute.xlu0 %309 }
 0x1d2   :  { %v312_v30 = vmul.f32 %v2807_v28, %v310_v29 }
 0x1d4   :  { %314 = vrot.lane.b32.xlu0 %v312_v30, %s3130_s3 }
 0x246   :  { %v315_v32 = vpop.permute.xlu0 %314 }
 0x247   :  { %v3339_v33 = vadd.f32 %v315_v32, %v307_v31 }
 0x249   :  { %2808 = vtanh.f32 %v3339_v33  ;;  %v521_v15 = vrot.slane %v3339_v33, 6 }
 0x253   :  { %v2809_v34 = vpop.eup %2808 }
 0x254   :  { %320 = vrot.lane.b32.xlu1 %v2809_v34, %s3129_s4 }
 0x2c6   :  { %v321_v47 = vpop.permute.xlu1 %320 }
 0x2c7   :  { %v323_v48 = vmul.f32 %v2807_v28, %v321_v47 }
 0x2c9   :  { %2810 = vtanh.f32 %v323_v48  ;;  %435 = vrot.lane.b32.xlu1 %v323_v48, %s3130_s3 }
 0x2d3   :  { %v2811_v49 = vpop.eup %2810 }
 0x2d4   :  { %326 = vrot.lane.b32.xlu0 %v2811_v49, %s3130_s3 }
 0x33b   :  { %v436_v50 = vpop.permute.xlu1 %435 }
 0x33c   :  { %2400 = vmatmul.mubr.msk.f32.vlgmr.msra.gmra.mrb[2].mxu1 %vm144_vm1, %v436_v50 }
 0x33d   :  { %2657 = vmatpush3.bf16.msra.mxu1 %v3343_v37  ;;  %2418 = vmatprep.mubr.msk.f32.mxu1 %vm3127_vm0, %v3128_v1 }
 0x33e   :  { %2658 = vmatprep.subr.bf16.mxu1 %v3126_v0 }
 0x341   :  { %2660 = vmatpush3.bf16.msra.mxu1 %v3347_v40 }
 0x342   :  { %2661 = vmatprep.subr.bf16.mxu1 %v3126_v0 }
 0x345   :  { %2663 = vmatpush3.bf16.msra.mxu1 %v3350_v43 }
 0x346   :  { %v327_v51 = vpop.permute.xlu0 %326  ;;  %2664 = vmatprep.subr.bf16.mxu1 %v3126_v0 }
 0x347   :  { %v329_v52 = vsel %vm144_vm1, %v327_v51, 0.0 }
 0x348   :  { %2389 = vmatmul.mubr.msk.f32.vlgmr.msra.gmra.mrb[2].mxu0 %vm336_vm2, %v329_v52 }
 0x349   :  { %2669 = vmatpush3.bf16.msra.mxu0 %v3309_v9  ;;  %2429 = vmatprep.mubr.msk.f32.mxu0 %vm3127_vm0, %v3128_v1 }
 0x34a   :  { %2670 = vmatprep.subr.bf16.mxu0 %v3126_v0  ;;  %2666 = vmatpush3.bf16.msra.mxu1 %v3354_v46 }
 0x34b   :  { %2685 = vmatprep.subr.bf16.mxu1 %v3126_v0 }
 0x34d   :  { %2672 = vmatpush3.bf16.msra.mxu0 %v3313_v14 }
 0x34e   :  { %2673 = vmatprep.subr.bf16.mxu0 %v3126_v0 }
 0x40f   :  { %v505_v53 = vpop.f32.mrb[2].mxu1 }
 0x410   :  { %v510_v54 = vrot.slane %v505_v53, 6  ;;  %v2401_v55 = vpop.f32.mrb[3].mxu1 }
 0x412   :  { %v512_v56 = vadd.f32 %v510_v54, %v3334_v22 }
 0x414   :  { %2812 = vtanh.f32 %v512_v56  ;;  %v2188_v63 = vmul.f32 -1.442695, %v512_v56 }
 0x41b   :  { %v406_v58 = vpop.f32.mrb[2].mxu0 }
 0x41c   :  { %v407_v59 = vadd.f32 %v3384_v57, %v406_v58  ;;  %v2390_v60 = vpop.f32.mrb[3].mxu0 }
 0x41e   :  { %v2813_v61 = vpop.eup %2812  ;;  %2814 = vtanh.f32 %v407_v59  ;;  %v2186_v2 = vmul.f32 -1.442695, %v407_v59 }
 0x41f   :  { %525 = vrot.lane.b32.xlu1 %v2813_v61, %s3129_s4  ;;  %2816 = vpow2.f32 %v2188_v63 }
 0x420   :  { %2818 = vpow2.f32 %v2186_v2 }
 0x428   :  { %v2815_v62 = vpop.eup %2814 }
 0x429   :  { %419 = vrot.lane.b32.xlu0 %v2815_v62, %s3129_s4  ;;  %v2817_v3 = vpop.eup %2816 }
 0x42a   :  { %v516_v4 = vadd.f32 1.0, %v2817_v3  ;;  %v2819_v5 = vpop.eup %2818 }
 0x42b   :  { %v413_v6 = vadd.f32 1.0, %v2819_v5 }
 0x42c   :  { %2820 = vrcp.f32 %v516_v4 }
 0x42d   :  { %2822 = vrcp.f32 %v413_v6 }
 0x436   :  { %v2821_v7 = vpop.eup %2820 }
 0x437   :  { %v2823_v11 = vpop.eup %2822  ;;  %v523_v16 = vmul.f32 %v2821_v7, %v521_v15 }
 0x438   :  { %v417_v20 = vmul.f32 0.0, %v2823_v11 }
 0x491   :  { %v526_v8 = vpop.permute.xlu1 %525 }
 0x492   :  { %v528_v10 = vmul.f32 %v2821_v7, %v526_v8 }
 0x494   :  { %530 = vrot.lane.b32.xlu1 %v528_v10, %s3130_s3 }
 0x49b   :  { %v420_v12 = vpop.permute.xlu0 %419 }
 0x49c   :  { %v422_v13 = vmul.f32 %v2823_v11, %v420_v12 }
 0x49e   :  { %424 = vrot.lane.b32.xlu0 %v422_v13, %s3130_s3 }
 0x506   :  { %v531_v17 = vpop.permute.xlu1 %530 }
 0x507   :  { %v3392_v18 = vadd.f32 %v531_v17, %v523_v16 }
 0x509   :  { %2824 = vtanh.f32 %v3392_v18  ;;  %v737_v2 = vrot.slane %v3392_v18, 6 }
 0x510   :  { %v425_v21 = vpop.permute.xlu0 %424 }
 0x511   :  { %v3395_v23 = vadd.f32 %v425_v21, %v417_v20 }
 0x513   :  { %v2825_v24 = vpop.eup %2824  ;;  %2826 = vtanh.f32 %v3395_v23 }
 0x514   :  { %536 = vrot.lane.b32.xlu1 %v2825_v24, %s3129_s4 }
 0x51d   :  { %v2827_v25 = vpop.eup %2826 }
 0x51e   :  { %430 = vrot.lane.b32.xlu0 %v2827_v25, %s3129_s4 }
 0x586   :  { %v537_v26 = vpop.permute.xlu1 %536 }
 0x587   :  { %v539_v27 = vmul.f32 %v2821_v7, %v537_v26 }
 0x589   :  { %2828 = vtanh.f32 %v539_v27  ;;  %v650_v28 = vrot.slane %v539_v27, 2 }
 0x58b   :  { %651 = vrot.lane.b32.xlu1 %v650_v28, %s3130_s3 }
 0x590   :  { %v431_v29 = vpop.permute.xlu0 %430 }
 0x591   :  { %v433_v30 = vmul.f32 %v2823_v11, %v431_v29 }
 0x593   :  { %v2829_v31 = vpop.eup %2828  ;;  %v546_v32 = vrot.slane %v433_v30, 6 }
 0x594   :  { %542 = vrot.lane.b32.xlu0 %v2829_v31, %s3130_s3 }
 0x595   :  { %547 = vrot.lane.b32.xlu1 %v546_v32, %s3129_s4 }
 0x5fd   :  { %v652_v33 = vpop.permute.xlu1 %651 }
 0x5fe   :  { %2430 = vmatmul.mubr.msk.f32.vlgmr.msra.gmra.mrb[4].mxu0 %vm144_vm1, %v652_v33 }
 0x5ff   :  { %2675 = vmatpush3.bf16.msra.mxu0 %v3343_v37  ;;  %2448 = vmatprep.mubr.msk.f32.mxu0 %vm3127_vm0, %v3128_v1 }
 0x600   :  { %2676 = vmatprep.subr.bf16.mxu0 %v3126_v0 }
 0x603   :  { %2678 = vmatpush3.bf16.msra.mxu0 %v3347_v40 }
 0x604   :  { %2679 = vmatprep.subr.bf16.mxu0 %v3126_v0 }
 0x606   :  { %v543_v34 = vpop.permute.xlu0 %542 }
 0x607   :  { %v548_v35 = vpop.permute.xlu1 %547  ;;  %2681 = vmatpush3.bf16.msra.mxu0 %v3350_v43 }
 0x608   :  { %v550_v36 = vsel %vm144_vm1, %v543_v34, %v548_v35  ;;  %2682 = vmatprep.subr.bf16.mxu0 %v3126_v0 }
 0x609   :  { %v552_v38 = vrot.slane %v550_v36, 2 }
 0x60b   :  { %2419 = vmatmul.mubr.msk.f32.vlgmr.msra.gmra.mrb[4].mxu1 %vm336_vm2, %v552_v38  ;;  %2684 = vmatpush3.bf16.msra.mxu0 %v3354_v46 }
 0x60c   :  { %2687 = vmatpush3.bf16.msra.mxu1 %v3309_v9  ;;  %2459 = vmatprep.mubr.msk.f32.mxu1 %vm3127_vm0, %v3128_v1 }
 0x60d   :  { %2688 = vmatprep.subr.bf16.mxu1 %v3126_v0  ;;  %2703 = vmatprep.subr.bf16.mxu0 %v3126_v0 }
 0x610   :  { %2690 = vmatpush3.bf16.msra.mxu1 %v3313_v14 }
 0x611   :  { %2691 = vmatprep.subr.bf16.mxu1 %v3126_v0 }
 0x6d1   :  { %v721_v39 = vpop.f32.mrb[4].mxu0 }
 0x6d2   :  { %v726_v41 = vrot.slane %v721_v39, 4  ;;  %v2431_v42 = vpop.f32.mrb[5].mxu0 }
 0x6d4   :  { %v728_v44 = vadd.f32 %v726_v41, %v3334_v22 }
 0x6d6   :  { %2830 = vtanh.f32 %v728_v44  ;;  %v2192_v51 = vmul.f32 -1.442695, %v728_v44 }
 0x6de   :  { %v621_v45 = vpop.f32.mrb[4].mxu1 }
 0x6df   :  { %v622_v47 = vadd.f32 %v3384_v57, %v621_v45  ;;  %v2420_v48 = vpop.f32.mrb[5].mxu1 }
 0x6e0   :  { %v2831_v49 = vpop.eup %2830 }
 0x6e1   :  { %2832 = vtanh.f32 %v622_v47  ;;  %741 = vrot.lane.b32.xlu0 %v2831_v49, %s3129_s4  ;;  %v2190_v52 = vmul.f32 -1.442695, %v622_v47 }
 0x6e2   :  { %2834 = vpow2.f32 %v2192_v51 }
 0x6e3   :  { %2836 = vpow2.f32 %v2190_v52 }
 0x6eb   :  { %v2833_v50 = vpop.eup %2832 }
 0x6ec   :  { %634 = vrot.lane.b32.xlu1 %v2833_v50, %s3129_s4  ;;  %v2835_v53 = vpop.eup %2834 }
 0x6ed   :  { %v732_v54 = vadd.f32 1.0, %v2835_v53  ;;  %v2837_v55 = vpop.eup %2836 }
 0x6ee   :  { %v628_v56 = vadd.f32 1.0, %v2837_v55 }
 0x6ef   :  { %2838 = vrcp.f32 %v732_v54 }
 0x6f0   :  { %2840 = vrcp.f32 %v628_v56 }
 0x6f9   :  { %v2839_v58 = vpop.eup %2838 }
 0x6fa   :  { %v2841_v61 = vpop.eup %2840  ;;  %v739_v3 = vmul.f32 %v2839_v58, %v737_v2 }
 0x6fb   :  { %v632_v6 = vmul.f32 %v2841_v61, %v3395_v23 }
 0x753   :  { %v742_v59 = vpop.permute.xlu0 %741 }
 0x754   :  { %v744_v60 = vmul.f32 %v2839_v58, %v742_v59 }
 0x756   :  { %746 = vrot.lane.b32.xlu0 %v744_v60, %s3130_s3 }
 0x75e   :  { %v635_v62 = vpop.permute.xlu1 %634 }
 0x75f   :  { %v637_v63 = vmul.f32 %v2841_v61, %v635_v62 }
 0x761   :  { %639 = vrot.lane.b32.xlu1 %v637_v63, %s3130_s3 }
 0x7c8   :  { %v747_v4 = vpop.permute.xlu0 %746 }
 0x7c9   :  { %v3429_v5 = vadd.f32 %v747_v4, %v739_v3 }
 0x7cb   :  { %2842 = vtanh.f32 %v3429_v5  ;;  %v953_v51 = vrot.slane %v3429_v5, 6 }
 0x7d3   :  { %v640_v7 = vpop.permute.xlu1 %639 }
 0x7d4   :  { %v3433_v8 = vadd.f32 %v640_v7, %v632_v6 }
 0x7d5   :  { %v2843_v10 = vpop.eup %2842 }
 0x7d6   :  { %2844 = vtanh.f32 %v3433_v8  ;;  %752 = vrot.lane.b32.xlu0 %v2843_v10, %s3129_s4 }
 0x7e0   :  { %v2845_v11 = vpop.eup %2844 }
 0x7e1   :  { %645 = vrot.lane.b32.xlu1 %v2845_v11, %s3129_s4 }
 0x848   :  { %v753_v12 = vpop.permute.xlu0 %752 }
 0x849   :  { %v755_v13 = vmul.f32 %v2839_v58, %v753_v12 }
 0x84b   :  { %2846 = vtanh.f32 %v755_v13  ;;  %v866_v15 = vrot.slane %v755_v13, 4 }
 0x84d   :  { %867 = vrot.lane.b32.xlu0 %v866_v15, %s3130_s3 }
 0x853   :  { %v646_v16 = vpop.permute.xlu1 %645 }
 0x854   :  { %v648_v17 = vmul.f32 %v2841_v61, %v646_v16 }
 0x855   :  { %v2847_v18 = vpop.eup %2846 }
 0x856   :  { %v762_v20 = vrot.slane %v648_v17, 4  ;;  %758 = vrot.lane.b32.xlu1 %v2847_v18, %s3130_s3 }
 0x858   :  { %763 = vrot.lane.b32.xlu0 %v762_v20, %s3129_s4 }
 0x8bf   :  { %v868_v21 = vpop.permute.xlu0 %867 }
 0x8c0   :  { %2460 = vmatmul.mubr.msk.f32.vlgmr.msra.gmra.mrb[6].mxu1 %vm144_vm1, %v868_v21 }
 0x8c1   :  { %2693 = vmatpush3.bf16.msra.mxu1 %v3343_v37  ;;  %2478 = vmatprep.mubr.msk.f32.mxu1 %vm3127_vm0, %v3128_v1 }
 0x8c2   :  { %2694 = vmatprep.subr.bf16.mxu1 %v3126_v0 }
 0x8c5   :  { %2696 = vmatpush3.bf16.msra.mxu1 %v3347_v40 }
 0x8c6   :  { %2697 = vmatprep.subr.bf16.mxu1 %v3126_v0 }
 0x8c8   :  { %v759_v23 = vpop.permute.xlu1 %758 }
 0x8c9   :  { %2699 = vmatpush3.bf16.msra.mxu1 %v3350_v43 }
 0x8ca   :  { %v764_v24 = vpop.permute.xlu0 %763  ;;  %2700 = vmatprep.subr.bf16.mxu1 %v3126_v0 }
 0x8cb   :  { %v766_v25 = vsel %vm144_vm1, %v759_v23, %v764_v24 }
 0x8cc   :  { %v768_v26 = vrot.slane %v766_v25, 4 }
 0x8cd   :  { %2702 = vmatpush3.bf16.msra.mxu1 %v3354_v46 }
 0x8ce   :  { %2449 = vmatmul.mubr.msk.f32.vlgmr.msra.gmra.mrb[6].mxu0 %vm336_vm2, %v768_v26  ;;  %2721 = vmatprep.subr.bf16.mxu1 %v3126_v0 }
 0x8cf   :  { %2705 = vmatpush3.bf16.msra.mxu0 %v3309_v9  ;;  %2489 = vmatprep.mubr.msk.f32.mxu0 %vm3127_vm0, %v3128_v1 }
 0x8d0   :  { %2706 = vmatprep.subr.bf16.mxu0 %v3126_v0 }
 0x8d3   :  { %2708 = vmatpush3.bf16.msra.mxu0 %v3313_v14 }
 0x8d4   :  { %2709 = vmatprep.subr.bf16.mxu0 %v3126_v0 }
 0x993   :  { %v937_v27 = vpop.f32.mrb[6].mxu1 }
 0x994   :  { %v942_v28 = vrot.slane %v937_v27, 2  ;;  %v2461_v29 = vpop.f32.mrb[7].mxu1 }
 0x996   :  { %v944_v30 = vadd.f32 %v942_v28, %v3334_v22 }
 0x998   :  { %2848 = vtanh.f32 %v944_v30  ;;  %v2196_v36 = vmul.f32 -1.442695, %v944_v30 }
 0x9a1   :  { %v837_v31 = vpop.f32.mrb[6].mxu0 }
 0x9a2   :  { %v2849_v32 = vpop.eup %2848  ;;  %v838_v33 = vadd.f32 %v3384_v57, %v837_v31  ;;  %v2450_v34 = vpop.f32.mrb[7].mxu0 }
 0x9a3   :  { %957 = vrot.lane.b32.xlu1 %v2849_v32, %s3129_s4 }
 0x9a4   :  { %2850 = vtanh.f32 %v838_v33  ;;  %v2194_v38 = vmul.f32 -1.442695, %v838_v33 }
 0x9a5   :  { %2852 = vpow2.f32 %v2196_v36 }
 0x9a6   :  { %2854 = vpow2.f32 %v2194_v38 }
 0x9ae   :  { %v2851_v35 = vpop.eup %2850 }
 0x9af   :  { %850 = vrot.lane.b32.xlu0 %v2851_v35, %s3129_s4  ;;  %v2853_v39 = vpop.eup %2852 }
 0x9b0   :  { %v948_v41 = vadd.f32 1.0, %v2853_v39  ;;  %v2855_v22 = vpop.eup %2854 }
 0x9b1   :  { %v844_v42 = vadd.f32 1.0, %v2855_v22 }
 0x9b2   :  { %2856 = vrcp.f32 %v948_v41 }
 0x9b3   :  { %2858 = vrcp.f32 %v844_v42 }
 0x9bc   :  { %v2857_v44 = vpop.eup %2856 }
 0x9bd   :  { %v2859_v48 = vpop.eup %2858  ;;  %v955_v52 = vmul.f32 %v2857_v44, %v953_v51 }
 0x9be   :  { %v848_v55 = vmul.f32 %v2859_v48, %v3433_v8 }
 0xa15   :  { %v958_v45 = vpop.permute.xlu1 %957 }
 0xa16   :  { %v960_v47 = vmul.f32 %v2857_v44, %v958_v45 }
 0xa18   :  { %962 = vrot.lane.b32.xlu1 %v960_v47, %s3130_s3 }
 0xa21   :  { %v851_v49 = vpop.permute.xlu0 %850 }
 0xa22   :  { %v853_v50 = vmul.f32 %v2859_v48, %v851_v49 }
 0xa24   :  { %855 = vrot.lane.b32.xlu0 %v853_v50, %s3130_s3 }
 0xa8a   :  { %v963_v53 = vpop.permute.xlu1 %962 }
 0xa8b   :  { %v3467_v54 = vadd.f32 %v963_v53, %v955_v52 }
 0xa8d   :  { %2860 = vtanh.f32 %v3467_v54  ;;  %v1166_v35 = vrot.slane %v3467_v54, 6 }
 0xa96   :  { %v856_v56 = vpop.permute.xlu0 %855 }
 0xa97   :  { %v2861_v58 = vpop.eup %2860  ;;  %v3471_v59 = vadd.f32 %v856_v56, %v848_v55 }
 0xa98   :  { %968 = vrot.lane.b32.xlu1 %v2861_v58, %s3129_s4 }
 0xa99   :  { %2862 = vtanh.f32 %v3471_v59 }
 0xaa3   :  { %v2863_v60 = vpop.eup %2862 }
 0xaa4   :  { %861 = vrot.lane.b32.xlu0 %v2863_v60, %s3129_s4 }
 0xb0a   :  { %v969_v61 = vpop.permute.xlu1 %968 }
 0xb0b   :  { %v971_v62 = vmul.f32 %v2857_v44, %v969_v61 }
 0xb0d   :  { %2864 = vtanh.f32 %v971_v62  ;;  %v1082_v63 = vrot.slane %v971_v62, 6 }
 0xb0f   :  { %1083 = vrot.lane.b32.xlu1 %v1082_v63, %s3130_s3 }
 0xb16   :  { %v862_v2 = vpop.permute.xlu0 %861 }
 0xb17   :  { %v2865_v3 = vpop.eup %2864  ;;  %v864_v4 = vmul.f32 %v2859_v48, %v862_v2 }
 0xb18   :  { %974 = vrot.lane.b32.xlu0 %v2865_v3, %s3130_s3 }
 0xb19   :  { %v978_v5 = vrot.slane %v864_v4, 2 }
 0xb1b   :  { %979 = vrot.lane.b32.xlu1 %v978_v5, %s3129_s4 }
 0xb81   :  { %v1084_v6 = vpop.permute.xlu1 %1083 }
 0xb82   :  { %2490 = vmatmul.mubr.msk.f32.vlgmr.msra.gmra.mrb[8].mxu0 %vm144_vm1, %v1084_v6 }
 0xb83   :  { %2711 = vmatpush3.bf16.msra.mxu0 %v3343_v37  ;;  %2508 = vmatprep.mubr.msk.f32.mxu0 %vm3127_vm0, %v3128_v1 }
 0xb84   :  { %2712 = vmatprep.subr.bf16.mxu0 %v3126_v0 }
 0xb87   :  { %2714 = vmatpush3.bf16.msra.mxu0 %v3347_v40 }
 0xb88   :  { %2715 = vmatprep.subr.bf16.mxu0 %v3126_v0 }
 0xb8a   :  { %v975_v7 = vpop.permute.xlu0 %974 }
 0xb8b   :  { %2717 = vmatpush3.bf16.msra.mxu0 %v3350_v43 }
 0xb8c   :  { %2718 = vmatprep.subr.bf16.mxu0 %v3126_v0 }
 0xb8d   :  { %v980_v8 = vpop.permute.xlu1 %979 }
 0xb8e   :  { %v982_v10 = vsel %vm144_vm1, %v975_v7, %v980_v8 }
 0xb8f   :  { %v984_v11 = vrot.slane %v982_v10, 6  ;;  %2720 = vmatpush3.bf16.msra.mxu0 %v3354_v46 }
 0xb90   :  { %2739 = vmatprep.subr.bf16.mxu0 %v3126_v0 }
 0xb91   :  { %2479 = vmatmul.mubr.msk.f32.vlgmr.msra.gmra.mrb[8].mxu1 %vm336_vm2, %v984_v11 }
 0xb92   :  { %2723 = vmatpush3.bf16.msra.mxu1 %v3309_v9  ;;  %2519 = vmatprep.mubr.msk.f32.mxu1 %vm3127_vm0, %v3128_v1 }
 0xb93   :  { %2724 = vmatprep.subr.bf16.mxu1 %v3126_v0 }
 0xb96   :  { %2726 = vmatpush3.bf16.msra.mxu1 %v3313_v14 }
 0xb97   :  { %2727 = vmatprep.subr.bf16.mxu1 %v3126_v0 }
 0xc55   :  { %v1153_v12 = vpop.f32.mrb[8].mxu0 }
 0xc56   :  { %v1157_v13 = vadd.f32 %v1153_v12, %v3332_v19  ;;  %v2491_v15 = vpop.f32.mrb[9].mxu0 }
 0xc58   :  { %2866 = vtanh.f32 %v1157_v13  ;;  %v2200_v23 = vmul.f32 -1.442695, %v1157_v13 }
 0xc62   :  { %v2867_v16 = vpop.eup %2866 }
 0xc63   :  { %1170 = vrot.lane.b32.xlu0 %v2867_v16, %s3129_s4 }
 0xc64   :  { %v1053_v17 = vpop.f32.mrb[8].mxu1 }
 0xc65   :  { %v1054_v18 = vadd.f32 %v3384_v57, %v1053_v17  ;;  %v2480_v20 = vpop.f32.mrb[9].mxu1 }
 0xc67   :  { %2868 = vtanh.f32 %v1054_v18  ;;  %v2198_v25 = vmul.f32 -1.442695, %v1054_v18 }
 0xc68   :  { %2870 = vpow2.f32 %v2200_v23 }
 0xc69   :  { %2872 = vpow2.f32 %v2198_v25 }
 0xc71   :  { %v2869_v21 = vpop.eup %2868 }
 0xc72   :  { %1066 = vrot.lane.b32.xlu1 %v2869_v21, %s3129_s4  ;;  %v2871_v24 = vpop.eup %2870 }
 0xc73   :  { %v1161_v26 = vadd.f32 1.0, %v2871_v24  ;;  %v2873_v27 = vpop.eup %2872 }
 0xc74   :  { %v1060_v31 = vadd.f32 1.0, %v2873_v27 }
 0xc75   :  { %2874 = vrcp.f32 %v1161_v26 }
 0xc76   :  { %2876 = vrcp.f32 %v1060_v31 }
 0xc7f   :  { %v2875_v28 = vpop.eup %2874 }
 0xc80   :  { %v2877_v32 = vpop.eup %2876  ;;  %v1168_v36 = vmul.f32 %v2875_v28, %v1166_v35 }
 0xc81   :  { %v1064_v22 = vmul.f32 %v2877_v32, %v3471_v59 }
 0xcd5   :  { %v1171_v29 = vpop.permute.xlu0 %1170 }
 0xcd6   :  { %v1173_v30 = vmul.f32 %v2875_v28, %v1171_v29 }
 0xcd8   :  { %1175 = vrot.lane.b32.xlu0 %v1173_v30, %s3130_s3 }
 0xce4   :  { %v1067_v33 = vpop.permute.xlu1 %1066 }
 0xce5   :  { %v1069_v34 = vmul.f32 %v2877_v32, %v1067_v33 }
 0xce7   :  { %1071 = vrot.lane.b32.xlu1 %v1069_v34, %s3130_s3 }
 0xd4a   :  { %v1176_v38 = vpop.permute.xlu0 %1175 }
 0xd4b   :  { %v3505_v39 = vadd.f32 %v1176_v38, %v1168_v36 }
 0xd4d   :  { %2878 = vtanh.f32 %v3505_v39  ;;  %v1379_v18 = vrot.slane %v3505_v39, 6 }
 0xd57   :  { %v2879_v41 = vpop.eup %2878 }
 0xd58   :  { %1181 = vrot.lane.b32.xlu0 %v2879_v41, %s3129_s4 }
 0xd59   :  { %v1072_v42 = vpop.permute.xlu1 %1071 }
 0xd5a   :  { %v3510_v44 = vadd.f32 %v1072_v42, %v1064_v22 }
 0xd5c   :  { %2880 = vtanh.f32 %v3510_v44 }
 0xd66   :  { %v2881_v45 = vpop.eup %2880 }
 0xd67   :  { %1077 = vrot.lane.b32.xlu1 %v2881_v45, %s3129_s4 }
 0xdca   :  { %v1182_v47 = vpop.permute.xlu0 %1181 }
 0xdcb   :  { %v1184_v48 = vmul.f32 %v2875_v28, %v1182_v47 }
 0xdcd   :  { %2882 = vtanh.f32 %v1184_v48  ;;  %1293 = vrot.lane.b32.xlu0 %v1184_v48, %s3130_s3 }
 0xdd7   :  { %v2883_v49 = vpop.eup %2882 }
 0xdd8   :  { %1187 = vrot.lane.b32.xlu1 %v2883_v49, %s3130_s3 }
 0xdd9   :  { %v1078_v50 = vpop.permute.xlu1 %1077 }
 0xdda   :  { %v1080_v51 = vmul.f32 %v2877_v32, %v1078_v50 }
 0xddc   :  { %1191 = vrot.lane.b32.xlu0 %v1080_v51, %s3129_s4 }
 0xe3f   :  { %v1294_v52 = vpop.permute.xlu0 %1293 }
 0xe40   :  { %2520 = vmatmul.mubr.msk.f32.vlgmr.msra.gmra.mrb[10].mxu1 %vm144_vm1, %v1294_v52 }
 0xe41   :  { %2729 = vmatpush3.bf16.msra.mxu1 %v3343_v37  ;;  %2538 = vmatprep.mubr.msk.f32.mxu1 %vm3127_vm0, %v3128_v1 }
 0xe42   :  { %2730 = vmatprep.subr.bf16.mxu1 %v3126_v0 }
 0xe45   :  { %2732 = vmatpush3.bf16.msra.mxu1 %v3347_v40 }
 0xe46   :  { %2733 = vmatprep.subr.bf16.mxu1 %v3126_v0 }
 0xe49   :  { %2735 = vmatpush3.bf16.msra.mxu1 %v3350_v43 }
 0xe4a   :  { %2736 = vmatprep.subr.bf16.mxu1 %v3126_v0  ;;  %v1188_v53 = vpop.permute.xlu1 %1187 }
 0xe4d   :  { %2738 = vmatpush3.bf16.msra.mxu1 %v3354_v46 }
 0xe4e   :  { %2757 = vmatprep.subr.bf16.mxu1 %v3126_v0  ;;  %v1192_v54 = vpop.permute.xlu0 %1191 }
 0xe4f   :  { %v1194_v55 = vsel %vm144_vm1, %v1188_v53, %v1192_v54 }
 0xe50   :  { %2509 = vmatmul.mubr.msk.f32.vlgmr.msra.gmra.mrb[10].mxu0 %vm336_vm2, %v1194_v55 }
 0xe51   :  { %2741 = vmatpush3.bf16.msra.mxu0 %v3309_v9  ;;  %2549 = vmatprep.mubr.msk.f32.mxu0 %vm3127_vm0, %v3128_v1 }
 0xe52   :  { %2742 = vmatprep.subr.bf16.mxu0 %v3126_v0 }
 0xe55   :  { %2744 = vmatpush3.bf16.msra.mxu0 %v3313_v14 }
 0xe56   :  { %2745 = vmatprep.subr.bf16.mxu0 %v3126_v0 }
 0xf13   :  { %v1363_v56 = vpop.f32.mrb[10].mxu1 }
 0xf14   :  { %v1368_v58 = vrot.slane %v1363_v56, 6  ;;  %v2521_v59 = vpop.f32.mrb[11].mxu1 }
 0xf16   :  { %v1370_v60 = vadd.f32 %v1368_v58, %v3332_v19 }
 0xf18   :  { %2884 = vtanh.f32 %v1370_v60  ;;  %v2204_v4 = vmul.f32 -1.442695, %v1370_v60 }
 0xf22   :  { %v2885_v61 = vpop.eup %2884 }
 0xf23   :  { %1383 = vrot.lane.b32.xlu1 %v2885_v61, %s3129_s4  ;;  %v1264_v62 = vpop.f32.mrb[10].mxu0 }
 0xf24   :  { %v1265_v63 = vadd.f32 %v3384_v57, %v1264_v62  ;;  %v2510_v2 = vpop.f32.mrb[11].mxu0 }
 0xf26   :  { %2886 = vtanh.f32 %v1265_v63  ;;  %v2202_v6 = vmul.f32 -1.442695, %v1265_v63 }
 0xf27   :  { %2888 = vpow2.f32 %v2204_v4 }
 0xf28   :  { %2890 = vpow2.f32 %v2202_v6 }
 0xf30   :  { %v2887_v3 = vpop.eup %2886 }
 0xf31   :  { %1277 = vrot.lane.b32.xlu0 %v2887_v3, %s3129_s4  ;;  %v2889_v5 = vpop.eup %2888 }
 0xf32   :  { %v1374_v7 = vadd.f32 1.0, %v2889_v5  ;;  %v2891_v8 = vpop.eup %2890 }
 0xf33   :  { %v1271_v13 = vadd.f32 1.0, %v2891_v8 }
 0xf34   :  { %2892 = vrcp.f32 %v1374_v7 }
 0xf35   :  { %2894 = vrcp.f32 %v1271_v13 }
 0xf3e   :  { %v2893_v10 = vpop.eup %2892 }
 0xf3f   :  { %v2895_v15 = vpop.eup %2894  ;;  %v1381_v20 = vmul.f32 %v2893_v10, %v1379_v18 }
 0xf40   :  { %v1275_v25 = vmul.f32 %v2895_v15, %v3510_v44 }
 0xf95   :  { %v1384_v11 = vpop.permute.xlu1 %1383 }
 0xf96   :  { %v1386_v12 = vmul.f32 %v2893_v10, %v1384_v11 }
 0xf98   :  { %1388 = vrot.lane.b32.xlu1 %v1386_v12, %s3130_s3 }
 0xfa3   :  { %v1278_v16 = vpop.permute.xlu0 %1277 }
 0xfa4   :  { %v1280_v17 = vmul.f32 %v2895_v15, %v1278_v16 }
 0xfa6   :  { %1282 = vrot.lane.b32.xlu0 %v1280_v17, %s3130_s3 }
0x100a   :  { %v1389_v21 = vpop.permute.xlu1 %1388 }
0x100b   :  { %v3543_v23 = vadd.f32 %v1389_v21, %v1381_v20 }
0x100d   :  { %2896 = vtanh.f32 %v3543_v23  ;;  %v1595_v2 = vrot.slane %v3543_v23, 6 }
0x1017   :  { %v2897_v24 = vpop.eup %2896 }
0x1018   :  { %1394 = vrot.lane.b32.xlu1 %v2897_v24, %s3129_s4  ;;  %v1283_v26 = vpop.permute.xlu0 %1282 }
0x1019   :  { %v3548_v27 = vadd.f32 %v1283_v26, %v1275_v25 }
0x101b   :  { %2898 = vtanh.f32 %v3548_v27 }
0x1025   :  { %v2899_v28 = vpop.eup %2898 }
0x1026   :  { %1288 = vrot.lane.b32.xlu0 %v2899_v28, %s3129_s4 }
0x108a   :  { %v1395_v29 = vpop.permute.xlu1 %1394 }
0x108b   :  { %v1397_v30 = vmul.f32 %v2893_v10, %v1395_v29 }
0x108d   :  { %2900 = vtanh.f32 %v1397_v30  ;;  %v1508_v31 = vrot.slane %v1397_v30, 2 }
0x108f   :  { %1509 = vrot.lane.b32.xlu1 %v1508_v31, %s3130_s3 }
0x1097   :  { %v2901_v32 = vpop.eup %2900 }
0x1098   :  { %1400 = vrot.lane.b32.xlu0 %v2901_v32, %s3130_s3  ;;  %v1289_v33 = vpop.permute.xlu0 %1288 }
0x1099   :  { %v1291_v34 = vmul.f32 %v2895_v15, %v1289_v33 }
0x109b   :  { %v1404_v35 = vrot.slane %v1291_v34, 6 }
0x109d   :  { %1405 = vrot.lane.b32.xlu1 %v1404_v35, %s3129_s4 }
0x1101   :  { %v1510_v36 = vpop.permute.xlu1 %1509 }
0x1102   :  { %2550 = vmatmul.mubr.msk.f32.vlgmr.msra.gmra.mrb[12].mxu0 %vm144_vm1, %v1510_v36 }
0x1103   :  { %2747 = vmatpush3.bf16.msra.mxu0 %v3343_v37  ;;  %2568 = vmatprep.mubr.msk.f32.mxu0 %vm3127_vm0, %v3128_v1 }
0x1104   :  { %2748 = vmatprep.subr.bf16.mxu0 %v3126_v0 }
0x1107   :  { %2750 = vmatpush3.bf16.msra.mxu0 %v3347_v40 }
0x1108   :  { %2751 = vmatprep.subr.bf16.mxu0 %v3126_v0 }
0x110a   :  { %v1401_v38 = vpop.permute.xlu0 %1400 }
0x110b   :  { %2753 = vmatpush3.bf16.msra.mxu0 %v3350_v43 }
0x110c   :  { %2754 = vmatprep.subr.bf16.mxu0 %v3126_v0 }
0x110f   :  { %2756 = vmatpush3.bf16.msra.mxu0 %v3354_v46  ;;  %v1406_v39 = vpop.permute.xlu1 %1405 }
0x1110   :  { %2775 = vmatprep.subr.bf16.mxu0 %v3126_v0  ;;  %v1408_v41 = vsel %vm144_vm1, %v1401_v38, %v1406_v39 }
0x1111   :  { %v1410_v22 = vrot.slane %v1408_v41, 2 }
0x1113   :  { %2539 = vmatmul.mubr.msk.f32.vlgmr.msra.gmra.mrb[12].mxu1 %vm336_vm2, %v1410_v22 }
0x1114   :  { %2759 = vmatpush3.bf16.msra.mxu1 %v3309_v9  ;;  %2579 = vmatprep.mubr.msk.f32.mxu1 %vm3127_vm0, %v3128_v1 }
0x1115   :  { %2760 = vmatprep.subr.bf16.mxu1 %v3126_v0 }
0x1118   :  { %2762 = vmatpush3.bf16.msra.mxu1 %v3313_v14 }
0x1119   :  { %2763 = vmatprep.subr.bf16.mxu1 %v3126_v0 }
0x11d5   :  { %v1579_v42 = vpop.f32.mrb[12].mxu0 }
0x11d6   :  { %v1584_v44 = vrot.slane %v1579_v42, 4  ;;  %v2551_v45 = vpop.f32.mrb[13].mxu0 }
0x11d8   :  { %v1586_v47 = vadd.f32 %v1584_v44, %v3332_v19 }
0x11da   :  { %2902 = vtanh.f32 %v1586_v47  ;;  %v2208_v14 = vmul.f32 -1.442695, %v1586_v47 }
0x11e4   :  { %v2903_v48 = vpop.eup %2902 }
0x11e5   :  { %1599 = vrot.lane.b32.xlu0 %v2903_v48, %s3129_s4 }
0x11e6   :  { %v1479_v49 = vpop.f32.mrb[12].mxu1 }
0x11e7   :  { %v1480_v9 = vadd.f32 %v3384_v57, %v1479_v49  ;;  %v2540_v50 = vpop.f32.mrb[13].mxu1 }
0x11e9   :  { %2904 = vtanh.f32 %v1480_v9  ;;  %v2206_v54 = vmul.f32 -1.442695, %v1480_v9 }
0x11ea   :  { %2906 = vpow2.f32 %v2208_v14 }
0x11f3   :  { %v2905_v51 = vpop.eup %2904 }
0x11f4   :  { %1492 = vrot.lane.b32.xlu1 %v2905_v51, %s3129_s4  ;;  %v2907_v52 = vpop.eup %2906 }
0x11f5   :  { %v1590_v53 = vadd.f32 1.0, %v2907_v52 }
0x11f7   :  { %2908 = vrcp.f32 %v1590_v53 }
0x11f8   :  { %2910 = vpow2.f32 %v2206_v54 }
0x1201   :  { %v2909_v55 = vpop.eup %2908 }
0x1202   :  { %v2911_v56 = vpop.eup %2910  ;;  %v1597_v3 = vmul.f32 %v2909_v55, %v1595_v2 }
0x1203   :  { %v1486_v60 = vadd.f32 1.0, %v2911_v56 }
0x1205   :  { %2912 = vrcp.f32 %v1486_v60 }
0x120f   :  { %v2913_v61 = vpop.eup %2912 }
0x1210   :  { %v1490_v7 = vmul.f32 %v2913_v61, %v3548_v27 }
0x1257   :  { %v1600_v58 = vpop.permute.xlu0 %1599 }
0x1258   :  { %v1602_v59 = vmul.f32 %v2909_v55, %v1600_v58 }
0x125a   :  { %1604 = vrot.lane.b32.xlu0 %v1602_v59, %s3130_s3 }
0x1266   :  { %v1493_v62 = vpop.permute.xlu1 %1492 }
0x1267   :  { %v1495_v63 = vmul.f32 %v2913_v61, %v1493_v62 }
0x1269   :  { %1497 = vrot.lane.b32.xlu1 %v1495_v63, %s3130_s3 }
0x12cc   :  { %v1605_v4 = vpop.permute.xlu0 %1604 }
0x12cd   :  { %v3581_v5 = vadd.f32 %v1605_v4, %v1597_v3 }
0x12cf   :  { %2914 = vtanh.f32 %v3581_v5  ;;  %v1811_v45 = vrot.slane %v3581_v5, 6 }
0x12d9   :  { %v2915_v6 = vpop.eup %2914 }
0x12da   :  { %1610 = vrot.lane.b32.xlu0 %v2915_v6, %s3129_s4 }
0x12db   :  { %v1498_v8 = vpop.permute.xlu1 %1497 }
0x12dc   :  { %v3586_v10 = vadd.f32 %v1498_v8, %v1490_v7 }
0x12de   :  { %2916 = vtanh.f32 %v3586_v10 }
0x12e8   :  { %v2917_v11 = vpop.eup %2916 }
0x12e9   :  { %1503 = vrot.lane.b32.xlu1 %v2917_v11, %s3129_s4 }
0x134c   :  { %v1611_v12 = vpop.permute.xlu0 %1610 }
0x134d   :  { %v1613_v13 = vmul.f32 %v2909_v55, %v1611_v12 }
0x134f   :  { %2918 = vtanh.f32 %v1613_v13  ;;  %v1724_v15 = vrot.slane %v1613_v13, 4  ;;  %v2215_v13 = vld [vmem:[#allocation8] ss:$0 sm:$0xff] }
0x1351   :  { %1725 = vrot.lane.b32.xlu0 %v1724_v15, %s3130_s3 }
0x1359   :  { %v2919_v16 = vpop.eup %2918 }
0x135a   :  { %1616 = vrot.lane.b32.xlu1 %v2919_v16, %s3130_s3 }
0x135b   :  { %v1504_v17 = vpop.permute.xlu1 %1503 }
0x135c   :  { %v1506_v18 = vmul.f32 %v2913_v61, %v1504_v17 }
0x135e   :  { %v1620_v20 = vrot.slane %v1506_v18, 4  ;;  %v2216_v18 = vld [vmem:[#allocation10] ss:$0 sm:$0xff] }
0x1360   :  { %1621 = vrot.lane.b32.xlu0 %v1620_v20, %s3129_s4  ;;  %v1983_v20 = vld [vmem:[%s3680_s8] sm:$0xff] }
0x13c3   :  { %v1726_v21 = vpop.permute.xlu0 %1725 }
0x13c4   :  { %2580 = vmatmul.mubr.msk.f32.vlgmr.msra.gmra.mrb[14].mxu1 %vm144_vm1, %v1726_v21  ;;  %v1984_v21 = vld [vmem:[%s3680_s8 + $0x8] sm:$0xff] }
0x13c5   :  { %2765 = vmatpush3.bf16.msra.mxu1 %v3343_v37  ;;  %2598 = vmatprep.mubr.msk.f32.mxu1 %vm3127_vm0, %v3128_v1 }
0x13c6   :  { %2766 = vmatprep.subr.bf16.mxu1 %v3126_v0 }
0x13c9   :  { %2768 = vmatpush3.bf16.msra.mxu1 %v3347_v40 }
0x13ca   :  { %2769 = vmatprep.subr.bf16.mxu1 %v3126_v0 }
0x13cc   :  { %v1617_v23 = vpop.permute.xlu1 %1616 }
0x13cd   :  { %2771 = vmatpush3.bf16.msra.mxu1 %v3350_v43 }
0x13ce   :  { %2772 = vmatprep.subr.bf16.mxu1 %v3126_v0 }
0x13d1   :  { %2774 = vmatpush3.bf16.msra.mxu1 %v3354_v46 }
0x13d2   :  { %v1622_v24 = vpop.permute.xlu0 %1621 }
0x13d3   :  { %v1624_v25 = vsel %vm144_vm1, %v1617_v23, %v1622_v24  ;;  %v1985_v23 = vld [vmem:[%s3680_s8 + $0x10] sm:$0xff]  ;;  %v2776_v24 = vpack.c.bf16 %v1984_v21, %v1983_v20 }
0x13d4   :  { %v1626_v37 = vrot.slane %v1624_v25, 4  ;;  %v1986_v25 = vld [vmem:[%s3680_s8 + $0x18] sm:$0xff] }
0x13d6   :  { %2569 = vmatmul.mubr.msk.f32.vlgmr.msra.gmra.mrb[14].mxu0 %vm336_vm2, %v1626_v37  ;;  %v2779_v37 = vpack.c.bf16 %v1986_v25, %v1985_v23 }
0x13d7   :  { %2609 = vmatprep.mubr.msk.f32.mxu0 %vm3127_vm0, %v3128_v1  ;;  %2777 = vmatpush3.bf16.msra.mxu0 %v2776_v24 }
0x13d8   :  { %2778 = vmatprep.subr.bf16.mxu0 %v3126_v0 }
0x13db   :  { %2780 = vmatpush3.bf16.msra.mxu0 %v2779_v37 }
0x13dc   :  { %2781 = vmatprep.subr.bf16.mxu0 %v3126_v0 }
0x1497   :  { %v1795_v26 = vpop.f32.mrb[14].mxu1 }
0x1498   :  { %v1800_v40 = vrot.slane %v1795_v26, 2  ;;  %v2581_v27 = vpop.f32.mrb[15].mxu1 }
0x149a   :  { %v1802_v28 = vadd.f32 %v1800_v40, %v3332_v19 }
0x149c   :  { %2920 = vtanh.f32 %v1802_v28  ;;  %v2212_v32 = vmul.f32 -1.442695, %v1802_v28 }
0x14a6   :  { %v2921_v43 = vpop.eup %2920 }
0x14a7   :  { %1815 = vrot.lane.b32.xlu1 %v2921_v43, %s3129_s4 }
0x14a9   :  { %v1695_v46 = vpop.f32.mrb[14].mxu0 }
0x14aa   :  { %v1696_v29 = vadd.f32 %v3384_v57, %v1695_v46  ;;  %v2570_v30 = vpop.f32.mrb[15].mxu0 }
0x14ac   :  { %2922 = vtanh.f32 %v1696_v29  ;;  %v2210_v35 = vmul.f32 -1.442695, %v1696_v29 }
0x14ad   :  { %2924 = vpow2.f32 %v2212_v32 }
0x14b6   :  { %v2923_v31 = vpop.eup %2922 }
0x14b7   :  { %1708 = vrot.lane.b32.xlu0 %v2923_v31, %s3129_s4  ;;  %v2925_v33 = vpop.eup %2924 }
0x14b8   :  { %v1806_v34 = vadd.f32 1.0, %v2925_v33 }
0x14ba   :  { %2926 = vrcp.f32 %v1806_v34 }
0x14bb   :  { %2928 = vpow2.f32 %v2210_v35 }
0x14c4   :  { %v2927_v19 = vpop.eup %2926 }
0x14c5   :  { %v2929_v38 = vpop.eup %2928  ;;  %v1813_v47 = vmul.f32 %v2927_v19, %v1811_v45 }
0x14c6   :  { %v1702_v41 = vadd.f32 1.0, %v2929_v38 }
0x14c8   :  { %2930 = vrcp.f32 %v1702_v41 }
0x14d2   :  { %v2931_v22 = vpop.eup %2930 }
0x14d3   :  { %v1706_v50 = vmul.f32 %v2931_v22, %v3586_v10 }
0x1519   :  { %v1816_v36 = vpop.permute.xlu1 %1815 }
0x151a   :  { %v1818_v39 = vmul.f32 %v2927_v19, %v1816_v36 }
0x151c   :  { %1820 = vrot.lane.b32.xlu1 %v1818_v39, %s3130_s3 }
0x1529   :  { %v1709_v42 = vpop.permute.xlu0 %1708 }
0x152a   :  { %v1711_v44 = vmul.f32 %v2931_v22, %v1709_v42 }
0x152c   :  { %1713 = vrot.lane.b32.xlu0 %v1711_v44, %s3130_s3 }
0x158e   :  { %v1821_v48 = vpop.permute.xlu1 %1820 }
0x158f   :  { %v1823_v49 = vadd.f32 %v1821_v48, %v1813_v47 }
0x1591   :  { %2932 = vtanh.f32 %v1823_v49 }
0x159b   :  { %v2933_v9 = vpop.eup %2932 }
0x159c   :  { %1826 = vrot.lane.b32.xlu1 %v2933_v9, %s3129_s4 }
0x159e   :  { %v1714_v51 = vpop.permute.xlu0 %1713 }
0x159f   :  { %v1716_v14 = vadd.f32 %v1714_v51, %v1706_v50 }
0x15a1   :  { %2934 = vtanh.f32 %v1716_v14 }
0x15ab   :  { %v2935_v52 = vpop.eup %2934 }
0x15ac   :  { %1719 = vrot.lane.b32.xlu0 %v2935_v52, %s3129_s4  ;;  %v2071_v52 = vld [vmem:[%s3682_s10 + $0x8] sm:$0xff] }
0x160e   :  { %v1827_v53 = vpop.permute.xlu1 %1826 }
0x160f   :  { %v1829_v54 = vmul.f32 %v2927_v19, %v1827_v53 }
0x1611   :  { %2936 = vtanh.f32 %v1829_v54 }
0x161b   :  { %v2937_v55 = vpop.eup %2936 }
0x161c   :  { %1832 = vrot.lane.b32.xlu1 %v2937_v55, %s3130_s3  ;;  %v2072_v55 = vld [vmem:[%s3682_s10 + $0x10] sm:$0xff] }
0x161e   :  { %v1720_v56 = vpop.permute.xlu0 %1719 }
0x161f   :  { %v1722_v58 = vmul.f32 %v2931_v22, %v1720_v56  ;;  %v2073_v56 = vld [vmem:[%s3682_s10 + $0x18] sm:$0xff] }
0x1621   :  { %v1836_v59 = vrot.slane %v1722_v58, 2  ;;  %v2785_v58 = vpack.c.bf16 %v2073_v56, %v2072_v55 }
0x1623   :  { %1837 = vrot.lane.b32.xlu0 %v1836_v59, %s3129_s4  ;;  %v2217_v59 = vld [vmem:[#allocation11] ss:$0 sm:$0xff] }
0x168e   :  { %v1833_v60 = vpop.permute.xlu1 %1832 }
0x1695   :  { %v1838_v61 = vpop.permute.xlu0 %1837 }
0x1696   :  { %v1840_v62 = vsel %vm144_vm1, %v1833_v60, %v1838_v61 }
0x1697   :  { %v1842_v63 = vrot.slane %v1840_v62, 6 }
0x1699   :  { %2599 = vmatmul.mubr.msk.f32.vlgmr.msra.gmra.mrb[16].mxu1 %vm336_vm2, %v1842_v63 }
0x176c   :  { %v1911_v2 = vpop.f32.mrb[16].mxu1 }
0x176d   :  { %v1912_v3 = vadd.f32 %v3384_v57, %v1911_v2  ;;  %v2600_v4 = vpop.f32.mrb[17].mxu1 }
0x176f   :  { %2938 = vtanh.f32 %v1912_v3  ;;  %v2214_v6 = vmul.f32 -1.442695, %v1912_v3 }
0x1771   :  { %2940 = vpow2.f32 %v2214_v6 }
0x1779   :  { %v2939_v5 = vpop.eup %2938 }
0x177a   :  { %1924 = vrot.lane.b32.xlu1 %v2939_v5, %s3129_s4 }
0x177b   :  { %v2941_v7 = vpop.eup %2940 }
0x177c   :  { %v1918_v8 = vadd.f32 1.0, %v2941_v7 }
0x177e   :  { %2942 = vrcp.f32 %v1918_v8 }
0x1788   :  { %v2943_v10 = vpop.eup %2942 }
0x1789   :  { %v1922_v15 = vmul.f32 %v2943_v10, %v1716_v14  ;;  %v2070_v14 = vld [vmem:[%s3682_s10] sm:$0xff]  ;;  %s3132_s10 = smov [#allocation13]  }
0x178a   :  { %v2782_v53 = vpack.c.bf16 %v2071_v52, %v2070_v14  ;;  %s2168_s27 = sshll.u32 %s3132_s10, 4  ;;  %s2169_s27 = int_to_ptr.vmem [resolvable:$true] %s2168_s27 }
0x178b   :  { %s3086_s28 = scalar_lea.vmem %s2169_s27, 32  ;;  %p3091_p7 = scmp.lt.s32.totalorder %s2169_s27, %s2169_s27 }
0x178c   :  { %p3087_p6 = scmp.ne.s32.totalorder %s2169_s27, %s3086_s28  ;;  %p3092_p8 = scmp.lt.s32.totalorder %s3086_s28, %s3086_s28 }
0x178e   :  { %p3093_p9 = por %p3092_p8, %p3091_p7 }
0x1790   :  { %p3094_p10 = pnand %p3093_p9, %p3087_p6 }
0x17ec   :  { %v1925_v11 = vpop.permute.xlu1 %1924 }
0x17ed   :  { %v1927_v12 = vmul.f32 %v2943_v10, %v1925_v11 }
0x17ef   :  { %1929 = vrot.lane.b32.xlu0 %v1927_v12, %s3130_s3 }
0x17f3   :  { %1969 = vrot.lane.b32.xlu0 %v2215_v13, %s3131_s5 }
0x1861   :  { %v1930_v57 = vpop.permute.xlu0 %1929 }
0x1862   :  { %v1932_v16 = vadd.f32 %v1930_v57, %v1922_v15 }
0x1864   :  { %2944 = vtanh.f32 %v1932_v16 }
0x1865   :  { %v1970_v48 = vpop.permute.xlu0 %1969 }
0x186e   :  { %v2945_v17 = vpop.eup %2944 }
0x186f   :  { %1935 = vrot.lane.b32.xlu1 %v2945_v17, %s3129_s4 }
0x1873   :  { %1979 = vrot.lane.b32.xlu1 %v2216_v18, %s3131_s5 }
0x18e1   :  { %v1936_v26 = vpop.permute.xlu1 %1935 }
0x18e2   :  { %v1938_v40 = vmul.f32 %v2943_v10, %v1936_v26 }
0x18e4   :  { %2946 = vtanh.f32 %v1938_v40 }
0x18e5   :  { %v1980_v9 = vpop.permute.xlu1 %1979 }
0x18ee   :  { %v2947_v27 = vpop.eup %2946 }
0x18ef   :  { %v1941_v28 = vsel %vm1940_vm3, %v2947_v27, 0.0 }
0x18f0   :  { %v1942_v43 = vrot.slane %v1941_v28, 4 }
0x18f2   :  { %v1943_v46 = vadd.f32 %v1942_v43, %v1941_v28 }
0x18f4   :  { %v1944_v29 = vrot.slane %v1943_v46, 2 }
0x18f6   :  { %v1945_v30 = vadd.f32 %v1944_v29, %v1943_v46 }
0x18f8   :  { %v1946_v31 = vrot.slane %v1945_v30, 1 }
0x18fa   :  { %v1947_v32 = vadd.f32 %v1946_v31, %v1945_v30 }
0x18fc   :  { %v1949_v33 = vmul.f32 0.5, %v1947_v32 }
0x18fe   :  { %v1950_v34 = vsub.f32 %v2947_v27, %v1949_v33 }
0x1900   :  { %v1951_v35 = vmul.f32 %v1950_v34, %v1950_v34 }
0x1902   :  { %v1952_v19 = vsel %vm1940_vm3, %v1951_v35, 0.0 }
0x1903   :  { %v1953_v36 = vrot.slane %v1952_v19, 4 }
0x1905   :  { %v1954_v38 = vadd.f32 %v1953_v36, %v1952_v19 }
0x1907   :  { %v1955_v39 = vrot.slane %v1954_v38, 2 }
0x1909   :  { %v1956_v41 = vadd.f32 %v1955_v39, %v1954_v38 }
0x190b   :  { %v1957_v22 = vrot.slane %v1956_v41, 1 }
0x190d   :  { %v1958_v42 = vadd.f32 %v1957_v22, %v1956_v41 }
0x190f   :  { %v1959_v44 = vmul.f32 0.5, %v1958_v42 }
0x1911   :  { %v1960_v45 = vadd.f32 1e-05, %v1959_v44 }
0x1913   :  { %2948 = vrsqrt.f32 %v1960_v45 }
0x191d   :  { %v2949_v47 = vpop.eup %2948 }
0x191e   :  { %v1962_v49 = vmul.f32 %v2949_v47, %v1950_v34 }
0x1920   :  { %v1972_v50 = vmul.f32 %v1970_v48, %v1962_v49 }
0x1922   :  { %v1982_v51 = vadd.f32 %v1980_v9, %v1972_v50 }
0x1924   :  { %1995 = vrot.lane.b32.xlu0 %v1982_v51, %s3130_s3 }
0x1996   :  { %v1996_v54 = vpop.permute.xlu0 %1995 }
0x1997   :  { %2610 = vmatmul.mubr.msk.f32.vlgmr.msra.gmra.mrb[16].mxu0 %vm144_vm1, %v1996_v54 }
0x1998   :  { %2783 = vmatpush3.bf16.msra.mxu0 %v2782_v53  ;;  %2620 = vmatprep.mubr.msk.f32.mxu0 %vm3127_vm0, %v3128_v1 }
0x1999   :  { %2784 = vmatprep.subr.bf16.mxu0 %v3126_v0  ;;  %v2219_v0 = vld [vmem:[%s3683_s11] ss:$0 sm:$0xff] }
0x199c   :  { %2786 = vmatpush3.bf16.msra.mxu0 %v2785_v58 }
0x1a6a   :  { %v2065_v60 = vpop.f32.mrb[16].mxu0 }
0x1a6b   :  { %v2066_v61 = vadd.f32 %v2217_v59, %v2065_v60  ;;  %v2611_v62 = vpop.f32.mrb[17].mxu0 }
0x1a6d   :  { %v2069_v63 = vmax.f32 %v2066_v61, 0.0 }
0x1a6f   :  { %2621 = vmatmul.mubr.msk.f32.vlgmr.msra.gmra.mrb[18].mxu0 %vm144_vm1, %v2069_v63 }
0x1b42   :  { %v2150_v1 = vpop.f32.mrb[18].mxu0 }
0x1b43   :  { %v2151_v2 = vadd.f32 %v2219_v0, %v2150_v1  ;;  %v2622_v3 = vpop.f32.mrb[19].mxu0 }
0x1b45   :  { %v2221_v4 = vmul.f32 -1.442695, %v2151_v2 }
0x1b47   :  { %2950 = vpow2.f32 %v2221_v4 }
0x1b51   :  { %v2951_v5 = vpop.eup %2950 }
0x1b52   :  { %v2157_v6 = vadd.f32 1.0, %v2951_v5 }
0x1b54   :  { %2952 = vrcp.f32 %v2157_v6 }
0x1b5e   :  { %v2953_v7 = vpop.eup %2952 }
0x1b5f   :  { %2161 = vst.msk [vmem:[#allocation13] sm:$0x3] %vm2160_vm4, %v2953_v7 }
0x1b60   :  { %3097 = shalt.err (!%p3094_p10)
}
0x1b61   :  { %s3098_s1 = scalar_lea.hbm %s3684_s12, 32 }
0x1b62   :  { %p3099_p11 = scmp.ne.s32.totalorder %s3684_s12, %s3098_s1  ;;  %p3102_p12 = scmp.lt.u32.totalorder %s3098_s1, %s3684_s12 }
0x1b64   :  { %p3104_p13 = pnand %p3102_p12, %p3099_p11 }
0x1b66   :  { %3107 = shalt.err (!%p3104_p13)
}
0x1b67   :  { %2171 = dma.vmem_to_hbm [thread:$0]  %s2169_s27, 32, %s3684_s12, [#allocation4]  }
0x1b68   :  { %3116 = dma.done.wait [#allocation4], 32  }
0x1b69   :  { %3117 = vsyncadd [#allocation4], 4294967264 }
0x1b6a   :  { %2175 = vsyncpa [#allocation3], 1 }
0x1b6b   :  { %2176 = vsyncpa [#allocation6], 1 }
0x1b6c   :  { %2177 = vsyncpa [#allocation9], 1 }
0x1b6d   :  { %2178 = vsyncpa [#allocation12], 1 }
0x1b6e   :  { %2179 = vsyncpa [#allocation4], 1 }

</bundles_post_ra>
